<compile_context>
chip_gen: v7x
topology: tpu7x:2x2x1
jax: 0.10.0
libtpu: 0.0.40
codegen_flags: <defaults>
</compile_context>

<pallas_src>
import functools

import jax
import jax.numpy as jnp
import numpy as np
from jax.experimental import pallas as pl
from jax.experimental.pallas import tpu as pltpu


# ---------------------------------------------------------------------------
# Fused kernel: conv3x3(pad 1) + bias + ReLU  ->  convT2x2(stride 2) + bias + ReLU
# ---------------------------------------------------------------------------
def _fused_vgg_up_kernel(xp_ref, w1_ref, b1_ref, w2_ref, b2_ref, o_ref,
                         *, TH, Wp, IC, C, OC, fuse_convT):
    """One (batch n, row-tile t) grid step.

    xp_ref : (1, Hp+2, Wp+2, IC) bf16  whole padded NHWC image of batch n
             (index_map ignores t -> DMA'd once per n, stays VMEM-resident)
    w1_ref : (9, IC, C)          bf16  3x3 conv weights, tap index = dy*3+dx
    b1_ref : (1, C)              f32
    w2_ref : (2, C, 2*OC) bf16  convT weights  w2[ky, c, kx*OC+oc]        (unfused)
             (1, C, 4*OC) bf16  convT weights  w2[0, c, ky*2*OC+kx*OC+oc]  (fused)
    b2_ref : (1, 2*OC) / (1, 4*OC) f32  convT bias tiled over (kx) / (ky, kx)
    o_ref  : (1, TH, 2, Wp, 2*OC) f32  output tile laid out [i, ky, j, kx*OC+oc]
    """
    t = pl.program_id(1)
    row0 = pl.multiple_of(t * TH, TH)          # first output row of this tile

    # ---- 3x3 conv: 9 accumulated K=IC bf16 matmuls straight from shifted
    # views of the resident padded image (no im2col staging / scratch).
    acc = jnp.zeros((TH * Wp, C), jnp.float32)
    for dy in range(3):
        for dx in range(3):
            win = xp_ref[0, pl.ds(row0 + dy, TH), dx:dx + Wp, :]   # (TH, Wp, IC) bf16
            acc = acc + jnp.dot(win.reshape(TH * Wp, IC),
                                w1_ref[dy * 3 + dx],
                                preferred_element_type=jnp.float32)
    # bias + ReLU in f32 on the VPU, then narrow to bf16 for the next MXU pass.
    y = jnp.maximum(acc + b1_ref[0], 0.0).astype(jnp.bfloat16)     # (TH*Wp, C)

    # ---- 2x2 / stride-2 transposed conv (kernel == stride -> no tap overlap),
    # bias + ReLU.  (kx, oc) packed on the lane axis -> contiguous block store.
    if fuse_convT:
        # single matmul, columns ordered [ky][kx*OC+oc]; lane-aligned split
        # (only taken when 2*OC % 128 == 0).
        z = jnp.dot(y, w2_ref[0], preferred_element_type=jnp.float32)
        z = jnp.maximum(z + b2_ref[0], 0.0)                        # (TH*Wp, 4*OC)
        for ky in range(2):
            o_ref[0, :, ky, :, :] = (
                z[:, ky * 2 * OC:(ky + 1) * 2 * OC].reshape(TH, Wp, 2 * OC))
    else:
        for ky in range(2):
            zk = jnp.dot(y, w2_ref[ky], preferred_element_type=jnp.float32)
            zk = jnp.maximum(zk + b2_ref[0], 0.0)                  # (TH*Wp, 2*OC)
            o_ref[0, :, ky, :, :] = zk.reshape(TH, Wp, 2 * OC)


# ---------------------------------------------------------------------------
# VMEM-aware tiling helpers
# ---------------------------------------------------------------------------
def _round_up(x, m):
    return ((x + m - 1) // m) * m


def _vmem_budget_bytes():
    """Per-chip working-set budget for one TensorCore."""
    try:
        cap = pltpu.get_tpu_info().vmem_capacity_bytes
    except Exception:  # info unavailable -> be conservative (v7x-class)
        cap = 64 * 1024 * 1024
    if cap <= 64 * 1024 * 1024:      # v7x: 64 MiB per TC
        return 48 * 1024 * 1024
    return 96 * 1024 * 1024          # v5e / v6e: 128 MiB physical


def _pick_row_tile(Hp, Wp, IC, C, OC, budget):
    """Largest 8-multiple divisor of Hp whose working set fits `budget`,
    preferring >= 2 grid steps per image (pipelining + megacore)."""
    # TH-independent residents: double-buffered bf16 padded image block
    # + (small) weights / biases (double-buffered).
    fixed = 2 * (Hp + 2) * (Wp + 2) * IC * 2
    fixed += 2 * (9 * IC * C * 2 + 4 * C + 4 * C * OC * 2 + 16 * OC)
    # per-output-row: double-buffered f32 output block + live in-kernel values
    # (f32 conv accumulator, bf16 activation, f32 convT tile, bf16 window).
    per_row = Wp * (2 * (2 * 2 * OC * 4) + 6 * C + 8 * OC + 2 * IC)
    cands = [th for th in range(8, Hp + 1, 8) if Hp % th == 0]
    if not cands:
        return Hp
    fits = [th for th in cands if fixed + th * per_row <= budget]
    if not fits:
        return cands[0]
    fits2 = [th for th in fits if Hp // th >= 2]
    return max(fits2) if fits2 else max(fits)


# ---------------------------------------------------------------------------
# Wrapper: full VGGUpBlock forward
# ---------------------------------------------------------------------------
def vgg_up_block_forward(x_nchw, w_conv, b_conv, w_convT, b_convT,
                         *, row_tile=None):
    """VGGUpBlock forward.

    x_nchw  : (N, IC, H, W) f32
    w_conv  : (3, 3, IC, C)  == torch Conv2d weight (C, IC, 3, 3).transpose(2, 3, 1, 0)
    b_conv  : (C,)
    w_convT : (2, 2, C, OC)  == torch ConvTranspose2d weight (C, OC, 2, 2).transpose(2, 3, 0, 1)
    b_convT : (OC,)
    returns : (N, OC, 2H, 2W) f32 (NCHW, like the PyTorch module)
    """
    N, IC, H, W = x_nchw.shape
    C = w_conv.shape[-1]
    OC = w_convT.shape[-1]

    # Pad spatial dims so all in-kernel reshapes are layout-preserving and an
    # 8-multiple row tile exists; padded rows/cols are cropped after the call.
    Hp = _round_up(H, 8)
    Wp = _round_up(W, 16)

    budget = _vmem_budget_bytes()
    TH = row_tile if row_tile is not None else _pick_row_tile(Hp, Wp, IC, C, OC, budget)
    assert Hp % TH == 0, (Hp, TH)
    T = Hp // TH

    # NCHW -> NHWC (channels on the lane axis), bf16 for DMA + MXU, then
    # 1-pixel conv halo plus the alignment padding (zeros).
    x = jnp.transpose(x_nchw, (0, 2, 3, 1)).astype(jnp.bfloat16)
    xp = jnp.pad(x, ((0, 0), (1, 1 + Hp - H), (1, 1 + Wp - W), (0, 0)))

    # One-time weight repacking (tiny).  MXU operands bf16, biases f32.
    w1 = w_conv.astype(jnp.bfloat16).reshape(9, IC, C)                # [dy*3+dx, ic, c]
    b1 = b_conv.astype(jnp.float32).reshape(1, C)
    fuse_convT = (2 * OC) % 128 == 0
    if fuse_convT:
        w2 = jnp.transpose(w_convT.astype(jnp.bfloat16),
                           (2, 0, 1, 3)).reshape(1, C, 4 * OC)        # [c, ky*2OC+kx*OC+oc]
        b2 = jnp.tile(b_convT.astype(jnp.float32), 4).reshape(1, 4 * OC)
    else:
        w2 = jnp.transpose(w_convT.astype(jnp.bfloat16),
                           (0, 2, 1, 3)).reshape(2, C, 2 * OC)        # [ky, c, kx*OC+oc]
        b2 = jnp.tile(b_convT.astype(jnp.float32), 2).reshape(1, 2 * OC)

    kernel = functools.partial(_fused_vgg_up_kernel,
                               TH=TH, Wp=Wp, IC=IC, C=C, OC=OC,
                               fuse_convT=fuse_convT)
    z = pl.pallas_call(
        kernel,
        out_shape=jax.ShapeDtypeStruct((N, Hp, 2, Wp, 2 * OC), jnp.float32),
        grid=(N, T),
        in_specs=[
            # whole padded image per batch element; index ignores t so the
            # block is fetched once per n and re-used across its row tiles.
            pl.BlockSpec((1, Hp + 2, Wp + 2, IC), lambda n, t: (n, 0, 0, 0)),
            # weights / biases: constant index_map -> VMEM-resident.
            pl.BlockSpec((9, IC, C), lambda n, t: (0, 0, 0)),
            pl.BlockSpec((1, C), lambda n, t: (0, 0)),
            pl.BlockSpec(w2.shape, lambda n, t: (0, 0, 0)),
            pl.BlockSpec(b2.shape, lambda n, t: (0, 0)),
        ],
        out_specs=pl.BlockSpec((1, TH, 2, Wp, 2 * OC),
                               lambda n, t: (n, t, 0, 0, 0)),
        compiler_params=pltpu.CompilerParams(
            # both axes independent -> megacore can shard them (v7x: 2 TCs).
            dimension_semantics=("parallel", "parallel"),
            vmem_limit_bytes=budget),
    )(xp, w1, b1, w2, b2)

    # Crop alignment padding, then (N, H, ky, W, kx*OC+oc) -> (N, 2H, 2W, OC)
    # via a contiguous reshape, then NHWC -> NCHW like the PyTorch module.
    z = z[:, :H, :, :W, :].reshape(N, 2 * H, 2 * W, OC)
    return jnp.transpose(z, (0, 3, 1, 2))


# ---------------------------------------------------------------------------
# Pure-JAX reference (f32, no Pallas) for a correctness sanity check.
# ---------------------------------------------------------------------------
def reference_forward(x_nchw, w_conv, b_conv, w_convT, b_convT):
    N, IC, H, W = x_nchw.shape
    C = w_conv.shape[-1]
    OC = w_convT.shape[-1]
    x = jnp.transpose(x_nchw, (0, 2, 3, 1)).astype(jnp.float32)
    xp = jnp.pad(x, ((0, 0), (1, 1), (1, 1), (0, 0)))
    y = jnp.zeros((N, H, W, C), jnp.float32)
    for dy in range(3):
        for dx in range(3):
            y = y + jnp.einsum('nhwc,cd->nhwd',
                               xp[:, dy:dy + H, dx:dx + W, :], w_conv[dy, dx])
    y = jnp.maximum(y + b_conv, 0.0)
    z = jnp.einsum('nhwc,klcd->nhwkld', y, w_convT) + b_convT
    z = jnp.maximum(z, 0.0)                              # (N, H, W, 2, 2, OC)
    z = jnp.transpose(z, (0, 1, 3, 2, 4, 5)).reshape(N, 2 * H, 2 * W, OC)
    return jnp.transpose(z, (0, 3, 1, 2))


if __name__ == "__main__":
    # Small, deterministic setup consistent with the module's config shapes.
    N, IC, C, OC, H, W = 2, 4, 8, 4, 16, 16

    key = jax.random.PRNGKey(0)
    k_x, k_w1, k_b1, k_w2, k_b2 = jax.random.split(key, 5)

    x = jax.random.normal(k_x, (N, IC, H, W), jnp.float32)
    # conv weights: (kH, kW, IC, C); convT weights: (kH, kW, C, OC)
    w_conv = 0.1 * jax.random.normal(k_w1, (3, 3, IC, C), jnp.float32)
    b_conv = 0.1 * jax.random.normal(k_b1, (C,), jnp.float32)
    w_convT = 0.1 * jax.random.normal(k_w2, (2, 2, C, OC), jnp.float32)
    b_convT = 0.1 * jax.random.normal(k_b2, (OC,), jnp.float32)

    out = vgg_up_block_forward(x, w_conv, b_conv, w_convT, b_convT)
    out = jax.block_until_ready(out)

    ref = jax.block_until_ready(
        reference_forward(x, w_conv, b_conv, w_convT, b_convT))

    assert out.shape == (N, OC, 2 * H, 2 * W), out.shape
    # bf16 MXU operands with f32 accumulation -> loosened tolerance vs f32 ref.
    np.testing.assert_allclose(np.asarray(out), np.asarray(ref),
                               rtol=2e-2, atol=2e-2)
    print("KERNEL_OK")
</pallas_src>

<mosaic_0001>
module attributes {stable_mosaic.version = 11 : i64} {
  func.func @_fused_vgg_up_kernel(%arg0: i32, %arg1: i32, %arg2: memref<1x18x18x4xbf16, #tpu.memory_space<vmem>>, %arg3: memref<9x4x8xbf16, #tpu.memory_space<vmem>>, %arg4: memref<1x8xf32, #tpu.memory_space<vmem>>, %arg5: memref<2x8x8xbf16, #tpu.memory_space<vmem>>, %arg6: memref<1x8xf32, #tpu.memory_space<vmem>>, %arg7: memref<1x8x2x16x8xf32, #tpu.memory_space<vmem>>) attributes {dimension_semantics = [#tpu.dimension_semantics<parallel>, #tpu.dimension_semantics<parallel>], iteration_bounds = array<i64: 2, 2>, scalar_prefetch = 0 : i64, scratch_operands = 0 : i64, tpu.core_type = #tpu.core_type<tc>, window_params = [{transform_indices = @transform_0, window_bounds = array<i64: 1, 18, 18, 4>}, {pipeline_mode = #tpu.pipeline_mode<synchronous>, transform_indices = @transform_1, window_bounds = array<i64: 9, 4, 8>}, {pipeline_mode = #tpu.pipeline_mode<synchronous>, transform_indices = @transform_2, window_bounds = array<i64: 1, 8>}, {pipeline_mode = #tpu.pipeline_mode<synchronous>, transform_indices = @transform_3, window_bounds = array<i64: 2, 8, 8>}, {pipeline_mode = #tpu.pipeline_mode<synchronous>, transform_indices = @transform_4, window_bounds = array<i64: 1, 8>}, {transform_indices = @transform_5, window_bounds = array<i64: 1, 8, 2, 16, 8>}]} {
    %c8_i32 = arith.constant 8 : i32
    %0 = arith.muli %arg1, %c8_i32 : i32
    %1 = tpu.assume_multiple %0, 8 : i32
    %cst = arith.constant 0.000000e+00 : f32
    %2 = vector.broadcast %cst : f32 to vector<128x8xf32>
    %c0_i32 = arith.constant 0 : i32
    %3 = arith.addi %1, %c0_i32 : i32
    %c0 = arith.constant 0 : index
    %4 = arith.index_cast %3 : i32 to index
    %c0_0 = arith.constant 0 : index
    %c0_1 = arith.constant 0 : index
    %5 = vector.load %arg2[%c0, %4, %c0_0, %c0_1] : memref<1x18x18x4xbf16, #tpu.memory_space<vmem>>, vector<1x8x16x4xbf16>
    %6 = vector.shape_cast %5 : vector<1x8x16x4xbf16> to vector<8x16x4xbf16>
    %7 = vector.shape_cast %6 : vector<8x16x4xbf16> to vector<128x4xbf16>
    %c0_2 = arith.constant 0 : index
    %c0_3 = arith.constant 0 : index
    %c0_4 = arith.constant 0 : index
    %8 = vector.load %arg3[%c0_2, %c0_3, %c0_4] : memref<9x4x8xbf16, #tpu.memory_space<vmem>>, vector<1x4x8xbf16>
    %9 = vector.shape_cast %8 : vector<1x4x8xbf16> to vector<4x8xbf16>
    %cst_5 = arith.constant dense<0.000000e+00> : vector<128x8xf32>
    %10 = tpu.matmul %7, %9, %cst_5 {dimension_numbers = #tpu.dot_dimension_numbers<[1], [0], [0], [1], [0, 0, 1, 1], [], []>} : vector<128x4xbf16>, vector<4x8xbf16>, vector<128x8xf32> -> vector<128x8xf32>
    %11 = arith.addf %2, %10 : vector<128x8xf32>
    %c0_i32_6 = arith.constant 0 : i32
    %12 = arith.addi %1, %c0_i32_6 : i32
    %c0_7 = arith.constant 0 : index
    %13 = arith.index_cast %12 : i32 to index
    %c1 = arith.constant 1 : index
    %c0_8 = arith.constant 0 : index
    %14 = vector.load %arg2[%c0_7, %13, %c1, %c0_8] : memref<1x18x18x4xbf16, #tpu.memory_space<vmem>>, vector<1x8x16x4xbf16>
    %15 = vector.shape_cast %14 : vector<1x8x16x4xbf16> to vector<8x16x4xbf16>
    %16 = vector.shape_cast %15 : vector<8x16x4xbf16> to vector<128x4xbf16>
    %c1_9 = arith.constant 1 : index
    %c0_10 = arith.constant 0 : index
    %c0_11 = arith.constant 0 : index
    %17 = vector.load %arg3[%c1_9, %c0_10, %c0_11] : memref<9x4x8xbf16, #tpu.memory_space<vmem>>, vector<1x4x8xbf16>
    %18 = vector.shape_cast %17 : vector<1x4x8xbf16> to vector<4x8xbf16>
    %cst_12 = arith.constant dense<0.000000e+00> : vector<128x8xf32>
    %19 = tpu.matmul %16, %18, %cst_12 {dimension_numbers = #tpu.dot_dimension_numbers<[1], [0], [0], [1], [0, 0, 1, 1], [], []>} : vector<128x4xbf16>, vector<4x8xbf16>, vector<128x8xf32> -> vector<128x8xf32>
    %20 = arith.addf %11, %19 : vector<128x8xf32>
    %c0_i32_13 = arith.constant 0 : i32
    %21 = arith.addi %1, %c0_i32_13 : i32
    %c0_14 = arith.constant 0 : index
    %22 = arith.index_cast %21 : i32 to index
    %c2 = arith.constant 2 : index
    %c0_15 = arith.constant 0 : index
    %23 = vector.load %arg2[%c0_14, %22, %c2, %c0_15] : memref<1x18x18x4xbf16, #tpu.memory_space<vmem>>, vector<1x8x16x4xbf16>
    %24 = vector.shape_cast %23 : vector<1x8x16x4xbf16> to vector<8x16x4xbf16>
    %25 = vector.shape_cast %24 : vector<8x16x4xbf16> to vector<128x4xbf16>
    %c2_16 = arith.constant 2 : index
    %c0_17 = arith.constant 0 : index
    %c0_18 = arith.constant 0 : index
    %26 = vector.load %arg3[%c2_16, %c0_17, %c0_18] : memref<9x4x8xbf16, #tpu.memory_space<vmem>>, vector<1x4x8xbf16>
    %27 = vector.shape_cast %26 : vector<1x4x8xbf16> to vector<4x8xbf16>
    %cst_19 = arith.constant dense<0.000000e+00> : vector<128x8xf32>
    %28 = tpu.matmul %25, %27, %cst_19 {dimension_numbers = #tpu.dot_dimension_numbers<[1], [0], [0], [1], [0, 0, 1, 1], [], []>} : vector<128x4xbf16>, vector<4x8xbf16>, vector<128x8xf32> -> vector<128x8xf32>
    %29 = arith.addf %20, %28 : vector<128x8xf32>
    %c1_i32 = arith.constant 1 : i32
    %30 = arith.addi %1, %c1_i32 : i32
    %c0_20 = arith.constant 0 : index
    %31 = arith.index_cast %30 : i32 to index
    %c0_21 = arith.constant 0 : index
    %c0_22 = arith.constant 0 : index
    %32 = vector.load %arg2[%c0_20, %31, %c0_21, %c0_22] : memref<1x18x18x4xbf16, #tpu.memory_space<vmem>>, vector<1x8x16x4xbf16>
    %33 = vector.shape_cast %32 : vector<1x8x16x4xbf16> to vector<8x16x4xbf16>
    %34 = vector.shape_cast %33 : vector<8x16x4xbf16> to vector<128x4xbf16>
    %c3 = arith.constant 3 : index
    %c0_23 = arith.constant 0 : index
    %c0_24 = arith.constant 0 : index
    %35 = vector.load %arg3[%c3, %c0_23, %c0_24] : memref<9x4x8xbf16, #tpu.memory_space<vmem>>, vector<1x4x8xbf16>
    %36 = vector.shape_cast %35 : vector<1x4x8xbf16> to vector<4x8xbf16>
    %cst_25 = arith.constant dense<0.000000e+00> : vector<128x8xf32>
    %37 = tpu.matmul %34, %36, %cst_25 {dimension_numbers = #tpu.dot_dimension_numbers<[1], [0], [0], [1], [0, 0, 1, 1], [], []>} : vector<128x4xbf16>, vector<4x8xbf16>, vector<128x8xf32> -> vector<128x8xf32>
    %38 = arith.addf %29, %37 : vector<128x8xf32>
    %c1_i32_26 = arith.constant 1 : i32
    %39 = arith.addi %1, %c1_i32_26 : i32
    %c0_27 = arith.constant 0 : index
    %40 = arith.index_cast %39 : i32 to index
    %c1_28 = arith.constant 1 : index
    %c0_29 = arith.constant 0 : index
    %41 = vector.load %arg2[%c0_27, %40, %c1_28, %c0_29] : memref<1x18x18x4xbf16, #tpu.memory_space<vmem>>, vector<1x8x16x4xbf16>
    %42 = vector.shape_cast %41 : vector<1x8x16x4xbf16> to vector<8x16x4xbf16>
    %43 = vector.shape_cast %42 : vector<8x16x4xbf16> to vector<128x4xbf16>
    %c4 = arith.constant 4 : index
    %c0_30 = arith.constant 0 : index
    %c0_31 = arith.constant 0 : index
    %44 = vector.load %arg3[%c4, %c0_30, %c0_31] : memref<9x4x8xbf16, #tpu.memory_space<vmem>>, vector<1x4x8xbf16>
    %45 = vector.shape_cast %44 : vector<1x4x8xbf16> to vector<4x8xbf16>
    %cst_32 = arith.constant dense<0.000000e+00> : vector<128x8xf32>
    %46 = tpu.matmul %43, %45, %cst_32 {dimension_numbers = #tpu.dot_dimension_numbers<[1], [0], [0], [1], [0, 0, 1, 1], [], []>} : vector<128x4xbf16>, vector<4x8xbf16>, vector<128x8xf32> -> vector<128x8xf32>
    %47 = arith.addf %38, %46 : vector<128x8xf32>
    %c1_i32_33 = arith.constant 1 : i32
    %48 = arith.addi %1, %c1_i32_33 : i32
    %c0_34 = arith.constant 0 : index
    %49 = arith.index_cast %48 : i32 to index
    %c2_35 = arith.constant 2 : index
    %c0_36 = arith.constant 0 : index
    %50 = vector.load %arg2[%c0_34, %49, %c2_35, %c0_36] : memref<1x18x18x4xbf16, #tpu.memory_space<vmem>>, vector<1x8x16x4xbf16>
    %51 = vector.shape_cast %50 : vector<1x8x16x4xbf16> to vector<8x16x4xbf16>
    %52 = vector.shape_cast %51 : vector<8x16x4xbf16> to vector<128x4xbf16>
    %c5 = arith.constant 5 : index
    %c0_37 = arith.constant 0 : index
    %c0_38 = arith.constant 0 : index
    %53 = vector.load %arg3[%c5, %c0_37, %c0_38] : memref<9x4x8xbf16, #tpu.memory_space<vmem>>, vector<1x4x8xbf16>
    %54 = vector.shape_cast %53 : vector<1x4x8xbf16> to vector<4x8xbf16>
    %cst_39 = arith.constant dense<0.000000e+00> : vector<128x8xf32>
    %55 = tpu.matmul %52, %54, %cst_39 {dimension_numbers = #tpu.dot_dimension_numbers<[1], [0], [0], [1], [0, 0, 1, 1], [], []>} : vector<128x4xbf16>, vector<4x8xbf16>, vector<128x8xf32> -> vector<128x8xf32>
    %56 = arith.addf %47, %55 : vector<128x8xf32>
    %c2_i32 = arith.constant 2 : i32
    %57 = arith.addi %1, %c2_i32 : i32
    %c0_40 = arith.constant 0 : index
    %58 = arith.index_cast %57 : i32 to index
    %c0_41 = arith.constant 0 : index
    %c0_42 = arith.constant 0 : index
    %59 = vector.load %arg2[%c0_40, %58, %c0_41, %c0_42] : memref<1x18x18x4xbf16, #tpu.memory_space<vmem>>, vector<1x8x16x4xbf16>
    %60 = vector.shape_cast %59 : vector<1x8x16x4xbf16> to vector<8x16x4xbf16>
    %61 = vector.shape_cast %60 : vector<8x16x4xbf16> to vector<128x4xbf16>
    %c6 = arith.constant 6 : index
    %c0_43 = arith.constant 0 : index
    %c0_44 = arith.constant 0 : index
    %62 = vector.load %arg3[%c6, %c0_43, %c0_44] : memref<9x4x8xbf16, #tpu.memory_space<vmem>>, vector<1x4x8xbf16>
    %63 = vector.shape_cast %62 : vector<1x4x8xbf16> to vector<4x8xbf16>
    %cst_45 = arith.constant dense<0.000000e+00> : vector<128x8xf32>
    %64 = tpu.matmul %61, %63, %cst_45 {dimension_numbers = #tpu.dot_dimension_numbers<[1], [0], [0], [1], [0, 0, 1, 1], [], []>} : vector<128x4xbf16>, vector<4x8xbf16>, vector<128x8xf32> -> vector<128x8xf32>
    %65 = arith.addf %56, %64 : vector<128x8xf32>
    %c2_i32_46 = arith.constant 2 : i32
    %66 = arith.addi %1, %c2_i32_46 : i32
    %c0_47 = arith.constant 0 : index
    %67 = arith.index_cast %66 : i32 to index
    %c1_48 = arith.constant 1 : index
    %c0_49 = arith.constant 0 : index
    %68 = vector.load %arg2[%c0_47, %67, %c1_48, %c0_49] : memref<1x18x18x4xbf16, #tpu.memory_space<vmem>>, vector<1x8x16x4xbf16>
    %69 = vector.shape_cast %68 : vector<1x8x16x4xbf16> to vector<8x16x4xbf16>
    %70 = vector.shape_cast %69 : vector<8x16x4xbf16> to vector<128x4xbf16>
    %c7 = arith.constant 7 : index
    %c0_50 = arith.constant 0 : index
    %c0_51 = arith.constant 0 : index
    %71 = vector.load %arg3[%c7, %c0_50, %c0_51] : memref<9x4x8xbf16, #tpu.memory_space<vmem>>, vector<1x4x8xbf16>
    %72 = vector.shape_cast %71 : vector<1x4x8xbf16> to vector<4x8xbf16>
    %cst_52 = arith.constant dense<0.000000e+00> : vector<128x8xf32>
    %73 = tpu.matmul %70, %72, %cst_52 {dimension_numbers = #tpu.dot_dimension_numbers<[1], [0], [0], [1], [0, 0, 1, 1], [], []>} : vector<128x4xbf16>, vector<4x8xbf16>, vector<128x8xf32> -> vector<128x8xf32>
    %74 = arith.addf %65, %73 : vector<128x8xf32>
    %c2_i32_53 = arith.constant 2 : i32
    %75 = arith.addi %1, %c2_i32_53 : i32
    %c0_54 = arith.constant 0 : index
    %76 = arith.index_cast %75 : i32 to index
    %c2_55 = arith.constant 2 : index
    %c0_56 = arith.constant 0 : index
    %77 = vector.load %arg2[%c0_54, %76, %c2_55, %c0_56] : memref<1x18x18x4xbf16, #tpu.memory_space<vmem>>, vector<1x8x16x4xbf16>
    %78 = vector.shape_cast %77 : vector<1x8x16x4xbf16> to vector<8x16x4xbf16>
    %79 = vector.shape_cast %78 : vector<8x16x4xbf16> to vector<128x4xbf16>
    %c8 = arith.constant 8 : index
    %c0_57 = arith.constant 0 : index
    %c0_58 = arith.constant 0 : index
    %80 = vector.load %arg3[%c8, %c0_57, %c0_58] : memref<9x4x8xbf16, #tpu.memory_space<vmem>>, vector<1x4x8xbf16>
    %81 = vector.shape_cast %80 : vector<1x4x8xbf16> to vector<4x8xbf16>
    %cst_59 = arith.constant dense<0.000000e+00> : vector<128x8xf32>
    %82 = tpu.matmul %79, %81, %cst_59 {dimension_numbers = #tpu.dot_dimension_numbers<[1], [0], [0], [1], [0, 0, 1, 1], [], []>} : vector<128x4xbf16>, vector<4x8xbf16>, vector<128x8xf32> -> vector<128x8xf32>
    %83 = arith.addf %74, %82 : vector<128x8xf32>
    %c0_60 = arith.constant 0 : index
    %c0_61 = arith.constant 0 : index
    %84 = vector.load %arg4[%c0_60, %c0_61] : memref<1x8xf32, #tpu.memory_space<vmem>>, vector<1x8xf32>
    %85 = vector.shape_cast %84 : vector<1x8xf32> to vector<8xf32>
    %86 = vector.shape_cast %85 : vector<8xf32> to vector<1x8xf32>
    %87 = vector.broadcast %86 : vector<1x8xf32> to vector<128x8xf32>
    %88 = arith.addf %83, %87 : vector<128x8xf32>
    %cst_62 = arith.constant 0.000000e+00 : f32
    %89 = vector.broadcast %cst_62 : f32 to vector<128x8xf32>
    %90 = arith.maximumf %88, %89 : vector<128x8xf32>
    %91 = arith.truncf %90 : vector<128x8xf32> to vector<128x8xbf16>
    %c0_63 = arith.constant 0 : index
    %c0_64 = arith.constant 0 : index
    %c0_65 = arith.constant 0 : index
    %92 = vector.load %arg5[%c0_63, %c0_64, %c0_65] : memref<2x8x8xbf16, #tpu.memory_space<vmem>>, vector<1x8x8xbf16>
    %93 = vector.shape_cast %92 : vector<1x8x8xbf16> to vector<8x8xbf16>
    %cst_66 = arith.constant dense<0.000000e+00> : vector<128x8xf32>
    %94 = tpu.matmul %91, %93, %cst_66 {dimension_numbers = #tpu.dot_dimension_numbers<[1], [0], [0], [1], [0, 0, 1, 1], [], []>} : vector<128x8xbf16>, vector<8x8xbf16>, vector<128x8xf32> -> vector<128x8xf32>
    %c0_67 = arith.constant 0 : index
    %c0_68 = arith.constant 0 : index
    %95 = vector.load %arg6[%c0_67, %c0_68] : memref<1x8xf32, #tpu.memory_space<vmem>>, vector<1x8xf32>
    %96 = vector.shape_cast %95 : vector<1x8xf32> to vector<8xf32>
    %97 = vector.shape_cast %96 : vector<8xf32> to vector<1x8xf32>
    %98 = vector.broadcast %97 : vector<1x8xf32> to vector<128x8xf32>
    %99 = arith.addf %94, %98 : vector<128x8xf32>
    %cst_69 = arith.constant 0.000000e+00 : f32
    %100 = vector.broadcast %cst_69 : f32 to vector<128x8xf32>
    %101 = arith.maximumf %99, %100 : vector<128x8xf32>
    %102 = vector.shape_cast %101 : vector<128x8xf32> to vector<8x16x8xf32>
    %c0_70 = arith.constant 0 : index
    %c0_71 = arith.constant 0 : index
    %c0_72 = arith.constant 0 : index
    %c0_73 = arith.constant 0 : index
    %c0_74 = arith.constant 0 : index
    %103 = vector.load %arg7[%c0_70, %c0_71, %c0_72, %c0_73, %c0_74] : memref<1x8x2x16x8xf32, #tpu.memory_space<vmem>>, vector<1x8x1x16x8xf32>
    %104 = vector.shape_cast %103 : vector<1x8x1x16x8xf32> to vector<8x16x8xf32>
    %105 = vector.shape_cast %102 : vector<8x16x8xf32> to vector<1x8x1x16x8xf32>
    tpu.vector_store %arg7[%c0_70, %c0_71, %c0_72, %c0_73, %c0_74], %105 {strides = array<i32>} : memref<1x8x2x16x8xf32, #tpu.memory_space<vmem>>, vector<1x8x1x16x8xf32>,
    %c1_75 = arith.constant 1 : index
    %c0_76 = arith.constant 0 : index
    %c0_77 = arith.constant 0 : index
    %106 = vector.load %arg5[%c1_75, %c0_76, %c0_77] : memref<2x8x8xbf16, #tpu.memory_space<vmem>>, vector<1x8x8xbf16>
    %107 = vector.shape_cast %106 : vector<1x8x8xbf16> to vector<8x8xbf16>
    %cst_78 = arith.constant dense<0.000000e+00> : vector<128x8xf32>
    %108 = tpu.matmul %91, %107, %cst_78 {dimension_numbers = #tpu.dot_dimension_numbers<[1], [0], [0], [1], [0, 0, 1, 1], [], []>} : vector<128x8xbf16>, vector<8x8xbf16>, vector<128x8xf32> -> vector<128x8xf32>
    %c0_79 = arith.constant 0 : index
    %c0_80 = arith.constant 0 : index
    %109 = vector.load %arg6[%c0_79, %c0_80] : memref<1x8xf32, #tpu.memory_space<vmem>>, vector<1x8xf32>
    %110 = vector.shape_cast %109 : vector<1x8xf32> to vector<8xf32>
    %111 = vector.shape_cast %110 : vector<8xf32> to vector<1x8xf32>
    %112 = vector.broadcast %111 : vector<1x8xf32> to vector<128x8xf32>
    %113 = arith.addf %108, %112 : vector<128x8xf32>
    %cst_81 = arith.constant 0.000000e+00 : f32
    %114 = vector.broadcast %cst_81 : f32 to vector<128x8xf32>
    %115 = arith.maximumf %113, %114 : vector<128x8xf32>
    %116 = vector.shape_cast %115 : vector<128x8xf32> to vector<8x16x8xf32>
    %c0_82 = arith.constant 0 : index
    %c0_83 = arith.constant 0 : index
    %c1_84 = arith.constant 1 : index
    %c0_85 = arith.constant 0 : index
    %c0_86 = arith.constant 0 : index
    %117 = vector.load %arg7[%c0_82, %c0_83, %c1_84, %c0_85, %c0_86] : memref<1x8x2x16x8xf32, #tpu.memory_space<vmem>>, vector<1x8x1x16x8xf32>
    %118 = vector.shape_cast %117 : vector<1x8x1x16x8xf32> to vector<8x16x8xf32>
    %119 = vector.shape_cast %116 : vector<8x16x8xf32> to vector<1x8x1x16x8xf32>
    tpu.vector_store %arg7[%c0_82, %c0_83, %c1_84, %c0_85, %c0_86], %119 {strides = array<i32>} : memref<1x8x2x16x8xf32, #tpu.memory_space<vmem>>, vector<1x8x1x16x8xf32>,
    return
  }
  func.func @transform_0(%arg0: i32, %arg1: i32) -> (i32, i32, i32, i32) {
    %c0_i32 = arith.constant 0 : i32
    %c0_i32_0 = arith.constant 0 : i32
    %c0_i32_1 = arith.constant 0 : i32
    %c0_i32_2 = arith.constant 0 : i32
    return %arg0, %c0_i32, %c0_i32_0, %c0_i32_1 : i32, i32, i32, i32
  }
  func.func @transform_1(%arg0: i32, %arg1: i32) -> (i32, i32, i32) {
    %c0_i32 = arith.constant 0 : i32
    %c0_i32_0 = arith.constant 0 : i32
    %c0_i32_1 = arith.constant 0 : i32
    %c0_i32_2 = arith.constant 0 : i32
    return %c0_i32, %c0_i32_0, %c0_i32_1 : i32, i32, i32
  }
  func.func @transform_2(%arg0: i32, %arg1: i32) -> (i32, i32) {
    %c0_i32 = arith.constant 0 : i32
    %c0_i32_0 = arith.constant 0 : i32
    %c0_i32_1 = arith.constant 0 : i32
    return %c0_i32, %c0_i32_0 : i32, i32
  }
  func.func @transform_3(%arg0: i32, %arg1: i32) -> (i32, i32, i32) {
    %c0_i32 = arith.constant 0 : i32
    %c0_i32_0 = arith.constant 0 : i32
    %c0_i32_1 = arith.constant 0 : i32
    %c0_i32_2 = arith.constant 0 : i32
    return %c0_i32, %c0_i32_0, %c0_i32_1 : i32, i32, i32
  }
  func.func @transform_4(%arg0: i32, %arg1: i32) -> (i32, i32) {
    %c0_i32 = arith.constant 0 : i32
    %c0_i32_0 = arith.constant 0 : i32
    %c0_i32_1 = arith.constant 0 : i32
    return %c0_i32, %c0_i32_0 : i32, i32
  }
  func.func @transform_5(%arg0: i32, %arg1: i32) -> (i32, i32, i32, i32, i32) {
    %c0_i32 = arith.constant 0 : i32
    %c0_i32_0 = arith.constant 0 : i32
    %c0_i32_1 = arith.constant 0 : i32
    %c0_i32_2 = arith.constant 0 : i32
    return %arg0, %arg1, %c0_i32, %c0_i32_0, %c0_i32_1 : i32, i32, i32, i32, i32
  }
}

</mosaic_0001>

<bundles_post_ra>
// kernel: tpu_custom_call.1
= control target key start
LH: loop header
LB: loop body
LE: loop exit
PB: predicated region body
PF: predicated region fallthrough
CT: control target
= control target key end

     0   :  { %s4073_s18 = smov 0   ;;  %s4075_s19 = smov 0   ;;  %s5099_s0 = inlined_call_operand.vmem [shape: bf16[2,18,18,4], index: 0, kind: input, shape index: {}]   ;;  %s5100_s1 = inlined_call_operand.vmem [shape: bf16[9,4,8], index: 1, kind: input, shape index: {}]   ;;  %s5101_s2 = inlined_call_operand.vmem [shape: f32[1,8], index: 2, kind: input, shape index: {}]   ;;  %s5102_s3 = inlined_call_operand.vmem [shape: bf16[2,8,8], index: 3, kind: input, shape index: {}]   ;;  %s5103_s4 = inlined_call_operand.vmem [shape: f32[1,8], index: 4, kind: input, shape index: {}]   ;;  %s5104_s5 = inlined_call_operand.vmem [shape: f32[2,16,2,16,8], index: 5, kind: output, shape index: {}]  }
   0x1   :  { %s4077_s20 = smov 0   ;;  %s4079_s21 = smov 0  }
   0x2   :  { %s4081_s22 = smov 0  }
   0x3 LB: > { %s24_s23 = sadd.s32 1, %s4033_s20  ;;  %s27_s24 = sadd.s32 1, %s4037_s21  ;;  %s4041_s22 = sphi %s4081_s22, %s15_s22   ;;  %s4037_s21 = sphi %s4079_s21, %s5131_s21   ;;  %s4033_s20 = sphi %s4077_s20, %s5130_s20   ;;  %s4029_s19 = sphi %s4075_s19, %s5129_s19   ;;  %s4025_s18 = sphi %s4073_s18, %s5128_s18  }
   0x4   : > { %p25_p0 = scmp.ge.s32.totalorder %s24_s23, 2  ;;  %p3175_p1 = scmp.ge.s32.totalorder %s4041_s22, 1 }
   0x5   : > { %p201_p2 = scmp.lt.s32.totalorder %s4041_s22, 5 }
   0x6   : > { %s5133_s23 = smov (%p25_p0, %s24_s23), 0  ;;  %s5135_s24 = smov (!%p25_p0, %s27_s24), %s4037_s21 }
   0x7   : > { %p202_p3 = pnand %p3175_p1, %p201_p2  ;;  %p29_p4 = scmp.ge.s32.totalorder %s5135_s24, 2 }
   0x9   : > { %s5137_s24 = smov (%p29_p4, %s5135_s24), 0  ;;  %205 = sbr.rel (%p202_p3) target bundleno = 704 (0x2c0), region = 40 }
  0x10   : > { %vm526_vm0 = vcmask 1041408   ;;  %v4108_v0 = vld [vmem:[%s5100_s1 + $0x6] sm:$0x3]  ;;  %p234_p5 = scmp.lt.s32.totalorder %s4029_s19, 1  ;;  %v3301_v2 = vld [vmem:[%s5100_s1 + $0x8] sm:$0x3] }
  0x11   : > { %3929 = vmatprep.subr.msk.bf16.mxu0 %vm526_vm0, %v4108_v0  ;;  %v4114_v1 = vsel %vm526_vm0, %v4108_v0, 0  ;;  %v3184_v3 = vld [vmem:[%s5100_s1 + $0x2] sm:$0x3]  ;;  %s3498_s6 = smul.u32 96, %s4025_s18  ;;  %v271_v5 = vld [vmem:[%s5100_s1] sm:$0x3] }
  0x12   : > { %5111 = vst [vmem:[#allocation2_spill] sm:$0xff] %v4114_v1  ;;  %3653 = vmatpush3.bf16.msra.mxu0 %v4114_v1  ;;  %s5139_s19 = smov (!%p234_p5, %s4029_s19), 1  ;;  %3926 = vmatprep.subr.msk.bf16.mxu1 %vm526_vm0, %v3184_v3  ;;  %v528_v4 = vsel %vm526_vm0, %v3184_v3, 0  ;;  %vm501_vm1 = vcmask 31744   ;;  %vm280_vm2 = vsmask.f32 3328 }
  0x13   : > { %3931 = vmatprep.subr.msk.bf16.mxu0 %vm526_vm0, %v3301_v2  ;;  %3599 = vmatpush3.bf16.msra.mxu1 %v528_v4  ;;  %s3938_s9 = smul.u32 216, %s5139_s19  ;;  %v3334_v7 = vld [vmem:[%s5100_s1 + $0xa] sm:$0x3]  ;;  %v1509_v9 = vsel %vm526_vm0, %v3301_v2, 0  ;;  %vm281_vm3 = vsmask.f32 7440 }
  0x14   : > { %3927 = vmatprep.subr.msk.bf16.mxu1 %vm526_vm0, %v271_v5  ;;  %vm4182_vm4 = vmor %vm280_vm2, %vm281_vm3  ;;  %v4189_v39 = vsel %vm526_vm0, %v3334_v7, 0  ;;  %v692_v49 = vsel %vm526_vm0, %v271_v5, 0  ;;  %vm815_vm5 = vcmask 1042432   ;;  %vm816_vm6 = vcmask 1046532   ;;  %s3179_s14 = sshll.u32 %s5139_s19, 6 }
  0x15   : > { %s238_s12 = scalar_lea.vmem %s5099_s0, %s3938_s9  ;;  %vm4447_vm7 = vmor %vm815_vm5, %vm816_vm6  ;;  %vm2796_vm8 = vcmask 1043456   ;;  %vm2771_vm9 = vcmask 64512  }
  0x16   : > { %s4137_s13 = scalar_lea.vmem %s238_s12, %s3498_s6  ;;  %s3177_s12 = sshll.u32 %s4025_s18, 3 }
  0x17   : > { %v3979_v6 = vld [vmem:[%s4137_s13 + $0xc] sm:$0xff]   ;;  %v3980_v8 = vld [vmem:[%s4137_s13 + $0x18] sm:$0xff]   ;;  %v3981_v10 = vld [vmem:[%s4137_s13 + $0x24] sm:$0xff]   ;;  %p242_p6 = scmp.lt.s32.totalorder %s3177_s12, 15 }
  0x18   : > { %3654 = vmatprep.mubr.msk.bf16.mxu0 %vm501_vm1, %v3979_v6  ;;  %v4149_v11 = vld [vmem:[%s4137_s13] sm:$0xf]  ;;  %v4152_v12 = vld [vmem:[%s4137_s13 + $0x4] sm:$0xf]  ;;  %v4155_v13 = vld [vmem:[%s4137_s13 + $0x8] sm:$0x1] }
  0x19   : > { %3655 = vmatmul.mubr.msk.bf16.vlgmr.msra.gmra.mrb[0].mxu0 %vm501_vm1, %v3980_v8  ;;  %v284_v14 = vshrl.u32 %v4149_v11, 16  ;;  %v287_v15 = vshll.u32 %v4149_v11, 16  ;;  %v293_v16 = vshll.u32 %v4152_v12, 16  ;;  %v297_v17 = vshrl.u32 %v4152_v12, 16  ;;  %v3982_v19 = vld [vmem:[%s4137_s13 + $0x30] sm:$0xff]   ;;  %s5141_s12 = smov (!%p242_p6, %s3177_s12), 15 }
  0x1a   : > { %3671 = vmatpush3.bf16.msra.mxu0 %v1509_v9  ;;  %3658 = vmatprep.mubr.msk.bf16.mxu0 %vm501_vm1, %v3981_v10  ;;  %v303_v18 = vshll.u32 %v4155_v13, 16  ;;  %v4168_v25 = vld [vmem:[%s4137_s13 + $0xc] sm:$0xf]  ;;  %v4171_v27 = vld [vmem:[%s4137_s13 + $0x10] sm:$0xf] }
  0x1b   : > { %3932 = vmatprep.subr.msk.bf16.mxu0 %vm526_vm0, %v3334_v7  ;;  %v286_v21 = vrot.slane %v284_v14, 4  ;;  %v289_v22 = vrot.slane %v287_v15, 5  ;;  %v295_v23 = vrot.slane %v293_v16, 5  ;;  %v299_v24 = vrot.slane %v297_v17, 4  ;;  %v4174_v28 = vld [vmem:[%s4137_s13 + $0x14] sm:$0x1] }
  0x1c   : > { %v305_v26 = vrot.slane %v303_v18, 5  ;;  %v308_v29 = vshrl.u32 %v4168_v25, 16  ;;  %v311_v32 = vshll.u32 %v4168_v25, 16  ;;  %v317_v33 = vshll.u32 %v4171_v27, 16  ;;  %v3277_v34 = vld [vmem:[%s4137_s13 + $0xc] sm:$0xf] }
  0x1d   : > { %v290_v30 = vor.u32 %v289_v22, %v286_v21  ;;  %v300_v31 = vor.u32 %v299_v24, %v295_v23  ;;  %v321_v37 = vshrl.u32 %v4171_v27, 16  ;;  %v327_v38 = vshll.u32 %v4174_v28, 16  ;;  %v4192_v44 = vld [vmem:[%s4137_s13 + $0x10] sm:$0xf]  ;;  %v4196_v47 = vld [vmem:[%s4137_s13 + $0x14] sm:$0x1] }
  0x1e   : > { %v310_v36 = vrot.slane %v308_v29, 4  ;;  %v313_v42 = vrot.slane %v311_v32, 5  ;;  %v319_v43 = vrot.slane %v317_v33, 5  ;;  %v1267_v48 = vshrl.u32 %v3277_v34, 16  ;;  %v4204_v54 = vld [vmem:[%s4137_s13 + $0x18] sm:$0xf] }
  0x1f   : > { %v291_v40 = vrot.slane %v290_v30, 4  ;;  %v301_v41 = vrot.slane %v300_v31, 4  ;;  %v323_v45 = vrot.slane %v321_v37, 4  ;;  %v329_v46 = vrot.slane %v327_v38, 5  ;;  %v4210_v63 = vld [vmem:[%s4137_s13 + $0x1c] sm:$0xf] }
  0x20   : > { %v314_v52 = vor.u32 %v313_v42, %v310_v36  ;;  %v1270_v53 = vshll.u32 %v3277_v34, 16  ;;  %v1269_v57 = vrot.slane %v1267_v48, 4  ;;  %v1276_v58 = vshll.u32 %v4192_v44, 16  ;;  %v4218_v10 = vld [vmem:[%s4137_s13 + $0x20] sm:$0x1] }
  0x21   : > { %3659 = vmatmul.mubr.msk.bf16.gmra.mrb[4].mxu0 %vm501_vm1, %v3982_v19  ;;  %v296_v50 = vsel %vm4182_vm4, %v291_v40, %v295_v23  ;;  %v306_v51 = vsel %vm4182_vm4, %v301_v41, %v305_v26  ;;  %v324_v56 = vor.u32 %v323_v45, %v319_v43  ;;  %v1280_v61 = vshrl.u32 %v4192_v44, 16  ;;  %5114 = vst [vmem:[#allocation3_spill] sm:$0xff] %v4218_v10  ;;  %v3280_v14 = vld [vmem:[%s4137_s13 + $0x18] sm:$0xf]  ;;  %v4226_v24 = vld [vmem:[%s4137_s13 + $0x1c] sm:$0xf] }
  0x22   : > { %v3185_v55 = vcombine.low %v296_v50, %v306_v51  ;;  %v315_v59 = vrot.slane %v314_v52, 4  ;;  %v1272_v60 = vrot.slane %v1270_v53, 5  ;;  %v1286_v62 = vshll.u32 %v4196_v47, 16  ;;  %v4232_v32 = vld [vmem:[%s5100_s1 + $0x4] sm:$0x3] }
  0x23   : > { %v325_v2 = vrot.slane %v324_v56, 4  ;;  %v1278_v3 = vrot.slane %v1276_v58, 5  ;;  %v332_v4 = vshrl.u32 %v4204_v54, 16  ;;  %v335_v5 = vshll.u32 %v4204_v54, 16  ;;  %v4238_v37 = vld [vmem:[%s4137_s13 + $0x20] sm:$0x1] }
  0x24   : > { %3600 = vmatprep.mubr.msk.bf16.mxu1 %vm501_vm1, %v3185_v55  ;;  %v320_v6 = vsel %vm4182_vm4, %v315_v59, %v319_v43  ;;  %v1273_v7 = vor.u32 %v1272_v60, %v1269_v57  ;;  %v1282_v8 = vrot.slane %v1280_v61, 4  ;;  %v1288_v9 = vrot.slane %v1286_v62, 5  ;;  %v4242_v45 = vld [vmem:[%s4137_s13 + $0x24] sm:$0xf]  ;;  %v4248_v52 = vld [vmem:[%s4137_s13 + $0x28] sm:$0xf] }
  0x25   : > { %v330_v15 = vsel %vm4182_vm4, %v325_v2, %v329_v46  ;;  %v334_v16 = vrot.slane %v332_v4, 4  ;;  %v337_v17 = vrot.slane %v335_v5, 5  ;;  %v341_v18 = vshll.u32 %v4210_v63, 16  ;;  %v4256_v60 = vld [vmem:[%s4137_s13 + $0x2c] sm:$0x1] }
  0x26   : > { %v3186_v19 = vcombine.low %v320_v6, %v330_v15  ;;  %v1274_v21 = vrot.slane %v1273_v7, 4  ;;  %v1283_v22 = vor.u32 %v1282_v8, %v1278_v3  ;;  %v345_v23 = vshrl.u32 %v4210_v63, 16  ;;  %5115 = vst [vmem:[#allocation4_spill] sm:$0xff] %v4256_v60  ;;  %v3283_v5 = vld [vmem:[%s4137_s13 + $0x24] sm:$0xf] }
  0x27   : > { %v338_v26 = vor.u32 %v337_v17, %v334_v16  ;;  %v343_v29 = vrot.slane %v341_v18, 5  ;;  %v351_v30 = vshll.u32 %v4218_v10, 16  ;;  %v1291_v31 = vshrl.u32 %v3280_v14, 16 }
  0x28   : > { %3601 = vmatmul.mubr.msk.bf16.vlgmr.msra.gmra.mrb[0].mxu1 %vm501_vm1, %v3186_v19  ;;  %v1279_v33 = vsel %vm4182_vm4, %v1274_v21, %v1278_v3  ;;  %v1284_v34 = vrot.slane %v1283_v22, 4  ;;  %v347_v36 = vrot.slane %v345_v23, 4  ;;  %v1294_v38 = vshll.u32 %v3280_v14, 16  ;;  %v4267_v14 = vld [vmem:[%s4137_s13 + $0x28] sm:$0xf] }
  0x29   : > { %v339_v40 = vrot.slane %v338_v26, 4  ;;  %v353_v41 = vrot.slane %v351_v30, 5  ;;  %v1293_v42 = vrot.slane %v1291_v31, 4  ;;  %v1300_v43 = vshll.u32 %v4226_v24, 16  ;;  %3617 = vmatpush3.bf16.msra.mxu1 %v692_v49  ;;  %v4274_v30 = vld [vmem:[%s4137_s13 + $0x2c] sm:$0x1] }
  0x2a   : > { %v1289_v46 = vsel %vm4182_vm4, %v1284_v34, %v1288_v9  ;;  %v348_v48 = vor.u32 %v347_v36, %v343_v29  ;;  %v1296_v50 = vrot.slane %v1294_v38, 5  ;;  %v1304_v51 = vshrl.u32 %v4226_v24, 16  ;;  %3928 = vmatprep.subr.msk.bf16.mxu1 %vm526_vm0, %v4232_v32  ;;  %v4278_v34 = vld [vmem:[%s4137_s13 + $0x30] sm:$0xf] }
  0x2b   : > { %v3302_v53 = vcombine.low %v1279_v33, %v1289_v46  ;;  %v344_v55 = vsel %vm4182_vm4, %v339_v40, %v343_v29  ;;  %v1302_v56 = vrot.slane %v1300_v43, 5  ;;  %v1310_v49 = vshll.u32 %v4238_v37, 16 }
  0x2c   : > { %v349_v57 = vrot.slane %v348_v48, 4  ;;  %v1297_v58 = vor.u32 %v1296_v50, %v1293_v42  ;;  %v1306_v59 = vrot.slane %v1304_v51, 4  ;;  %v356_v61 = vshrl.u32 %v4242_v45, 16  ;;  %v4286_v50 = vld [vmem:[%s5100_s1 + $0xc] sm:$0x3] }
  0x2d   : > { %3672 = vmatprep.mubr.msk.bf16.mxu0 %vm501_vm1, %v3302_v53  ;;  %v1312_v62 = vrot.slane %v1310_v49, 5  ;;  %v359_v2 = vshll.u32 %v4242_v45, 16  ;;  %v365_v3 = vshll.u32 %v4248_v52, 16  ;;  %v369_v4 = vshrl.u32 %v4248_v52, 16 }
  0x2e   : > { %v354_v6 = vsel %vm4182_vm4, %v349_v57, %v353_v41  ;;  %v1298_v7 = vrot.slane %v1297_v58, 4  ;;  %v1307_v8 = vor.u32 %v1306_v59, %v1302_v56  ;;  %v358_v9 = vrot.slane %v356_v61, 4  ;;  %v4299_v61 = vld [vmem:[%s4137_s13 + $0x38] sm:$0x1] }
  0x2f   : > { %v3187_v15 = vcombine.low %v344_v55, %v354_v6  ;;  %v361_v16 = vrot.slane %v359_v2, 5  ;;  %v367_v17 = vrot.slane %v365_v3, 5  ;;  %v371_v18 = vrot.slane %v369_v4, 4  ;;  %v3286_v2 = vld [vmem:[%s4137_s13 + $0x30] sm:$0xf] }
  0x30   : > { %v1303_v19 = vsel %vm4182_vm4, %v1298_v7, %v1302_v56  ;;  %v1308_v21 = vrot.slane %v1307_v8, 4  ;;  %v375_v22 = vshll.u32 %v4256_v60, 16  ;;  %v1315_v23 = vshrl.u32 %v3283_v5, 16  ;;  %v4290_v56 = vld [vmem:[%s4137_s13 + $0x34] sm:$0xf] }
  0x31   : > { %3604 = vmatprep.mubr.msk.bf16.mxu1 %vm501_vm1, %v3187_v15  ;;  %v362_v26 = vor.u32 %v361_v16, %v358_v9  ;;  %v372_v29 = vor.u32 %v371_v18, %v367_v17  ;;  %v1318_v31 = vshll.u32 %v3283_v5, 16  ;;  %v1324_v33 = vshll.u32 %v4267_v14, 16 }
  0x32   : > { %v1313_v36 = vsel %vm4182_vm4, %v1308_v21, %v1312_v62  ;;  %v377_v38 = vrot.slane %v375_v22, 5  ;;  %v1317_v40 = vrot.slane %v1315_v23, 4  ;;  %v1328_v41 = vshrl.u32 %v4267_v14, 16 }
  0x33   : > { %v3303_v42 = vcombine.low %v1303_v19, %v1313_v36  ;;  %v363_v43 = vrot.slane %v362_v26, 4  ;;  %v373_v46 = vrot.slane %v372_v29, 4  ;;  %v1320_v48 = vrot.slane %v1318_v31, 5  ;;  %v4316_v29 = vld [vmem:[%s4137_s13 + $0x38] sm:$0x1] }
  0x34   : > { %v1326_v51 = vrot.slane %v1324_v33, 5  ;;  %v1330_v53 = vrot.slane %v1328_v41, 4  ;;  %v1334_v55 = vshll.u32 %v4274_v30, 16  ;;  %v380_v49 = vshrl.u32 %v4278_v34, 16  ;;  %v4319_v31 = vld [vmem:[%s4137_s13 + $0x3c] sm:$0xf] }
  0x35   : > { %3673 = vmatmul.mubr.msk.bf16.vlgmr.msra.gmra.mrb[0].mxu0 %vm501_vm1, %v3303_v42  ;;  %v368_v57 = vsel %vm4182_vm4, %v363_v43, %v367_v17  ;;  %v378_v58 = vsel %vm4182_vm4, %v373_v46, %v377_v38  ;;  %v1321_v59 = vor.u32 %v1320_v48, %v1317_v40  ;;  %v383_v62 = vshll.u32 %v4278_v34, 16  ;;  %v4311_v17 = vld [vmem:[%s4137_s13 + $0x34] sm:$0xf] }
  0x36   : > { %3689 = vmatpush3.bf16.msra.mxu0 %v4189_v39  ;;  %v3188_v3 = vcombine.low %v368_v57, %v378_v58  ;;  %v1331_v4 = vor.u32 %v1330_v53, %v1326_v51  ;;  %v1336_v5 = vrot.slane %v1334_v55, 5  ;;  %v382_v6 = vrot.slane %v380_v49, 4  ;;  %v4327_v55 = vld [vmem:[%s4137_s13 + $0x40] sm:$0xf] }
  0x37   : > { %v1322_v7 = vrot.slane %v1321_v59, 4  ;;  %v385_v8 = vrot.slane %v383_v62, 5  ;;  %v389_v9 = vshll.u32 %v4290_v56, 16  ;;  %v393_v15 = vshrl.u32 %v4290_v56, 16  ;;  %3933 = vmatprep.subr.msk.bf16.mxu0 %vm526_vm0, %v4286_v50  ;;  %v4334_v62 = vld [vmem:[%s4137_s13 + $0x44] sm:$0x1] }
  0x38   : > { %3605 = vmatmul.mubr.msk.bf16.gmra.mrb[4].mxu1 %vm501_vm1, %v3188_v3  ;;  %v1332_v16 = vrot.slane %v1331_v4, 4  ;;  %v399_v39 = vshll.u32 %v4299_v61, 16  ;;  %v1339_v18 = vshrl.u32 %v3286_v2, 16  ;;  %v1342_v19 = vshll.u32 %v3286_v2, 16  ;;  %5116 = vst [vmem:[#allocation5_spill] sm:$0xff] %v4334_v62 }
  0x39   : > { %v1327_v21 = vsel %vm4182_vm4, %v1322_v7, %v1326_v51  ;;  %v386_v22 = vor.u32 %v385_v8, %v382_v6  ;;  %v391_v23 = vrot.slane %v389_v9, 5  ;;  %v395_v26 = vrot.slane %v393_v15, 4  ;;  %v3289_v7 = vld [vmem:[%s4137_s13 + $0x3c] sm:$0xf] }
  0x3a   : > { %v1337_v33 = vsel %vm4182_vm4, %v1332_v16, %v1336_v5  ;;  %v401_v36 = vrot.slane %v399_v39, 5  ;;  %v1341_v38 = vrot.slane %v1339_v18, 4  ;;  %v1344_v40 = vrot.slane %v1342_v19, 5  ;;  %v4343_v39 = vld [vmem:[%s4137_s13 + $0x40] sm:$0xf] }
  0x3b   : > { %v3304_v41 = vcombine.low %v1327_v21, %v1337_v33  ;;  %v387_v42 = vrot.slane %v386_v22, 4  ;;  %v396_v43 = vor.u32 %v395_v26, %v391_v23  ;;  %v1348_v46 = vshll.u32 %v4311_v17, 16 }
  0x3c   : > { %v1345_v48 = vor.u32 %v1344_v40, %v1341_v38  ;;  %v1352_v51 = vshrl.u32 %v4311_v17, 16  ;;  %v1358_v53 = vshll.u32 %v4316_v29, 16  ;;  %v404_v49 = vshrl.u32 %v4319_v31, 16  ;;  %v4352_v40 = vld [vmem:[%s4137_s13 + $0x48] sm:$0xf] }
  0x3d   : > { %3676 = vmatprep.mubr.msk.bf16.mxu0 %vm501_vm1, %v3304_v41  ;;  %v392_v57 = vsel %vm4182_vm4, %v387_v42, %v391_v23  ;;  %v397_v58 = vrot.slane %v396_v43, 4  ;;  %v1350_v59 = vrot.slane %v1348_v46, 5  ;;  %v407_v2 = vshll.u32 %v4319_v31, 16  ;;  %v4349_v23 = vld [vmem:[%s4137_s13 + $0x44] sm:$0x1] }
  0x3e   : > { %v1346_v3 = vrot.slane %v1345_v48, 4  ;;  %v1354_v4 = vrot.slane %v1352_v51, 4  ;;  %v1360_v5 = vrot.slane %v1358_v53, 5  ;;  %v406_v6 = vrot.slane %v404_v49, 4  ;;  %v4357_v48 = vld [vmem:[%s4137_s13 + $0x4c] sm:$0xf] }
  0x3f   : > { %v402_v8 = vsel %vm4182_vm4, %v397_v58, %v401_v36  ;;  %v409_v9 = vrot.slane %v407_v2, 5  ;;  %v413_v15 = vshll.u32 %v4327_v55, 16  ;;  %v417_v16 = vshrl.u32 %v4327_v55, 16 }
  0x40   : > { %v3189_v18 = vcombine.low %v392_v57, %v402_v8  ;;  %v1351_v19 = vsel %vm4182_vm4, %v1346_v3, %v1350_v59  ;;  %v1355_v21 = vor.u32 %v1354_v4, %v1350_v59  ;;  %v423_v22 = vshll.u32 %v4334_v62, 16  ;;  %v4364_v4 = vld [vmem:[%s4137_s13 + $0x50] sm:$0x1]  ;;  %v3318_v62 = vld [vmem:[%s4137_s13 + $0xc] sm:$0xe] }
  0x41   : > { %v410_v26 = vor.u32 %v409_v9, %v406_v6  ;;  %v415_v33 = vrot.slane %v413_v15, 5  ;;  %v419_v36 = vrot.slane %v417_v16, 4  ;;  %v1363_v38 = vshrl.u32 %v3289_v7, 16  ;;  %5117 = vst [vmem:[#allocation6_spill] sm:$0xff] %v4364_v4  ;;  %v3292_v15 = vld [vmem:[%s4137_s13 + $0x48] sm:$0xf] }
  0x42   : > { %3608 = vmatprep.mubr.msk.bf16.mxu1 %vm501_vm1, %v3189_v18  ;;  %v1356_v41 = vrot.slane %v1355_v21, 4  ;;  %v425_v42 = vrot.slane %v423_v22, 5  ;;  %v1366_v43 = vshll.u32 %v3289_v7, 16  ;;  %v1372_v46 = vshll.u32 %v4343_v39, 16  ;;  %v4372_v22 = vld [vmem:[%s4137_s13 + $0x4c] sm:$0xf] }
  0x43   : > { %v411_v51 = vrot.slane %v410_v26, 4  ;;  %v420_v53 = vor.u32 %v419_v36, %v415_v33  ;;  %v1365_v49 = vrot.slane %v1363_v38, 4  ;;  %v1376_v57 = vshrl.u32 %v4343_v39, 16 }
  0x44   : > { %v1361_v58 = vsel %vm4182_vm4, %v1356_v41, %v1360_v5  ;;  %v1368_v59 = vrot.slane %v1366_v43, 5  ;;  %v1374_v2 = vrot.slane %v1372_v46, 5  ;;  %v1382_v3 = vshll.u32 %v4349_v23, 16 }
  0x45   : > { %v3305_v6 = vcombine.low %v1351_v19, %v1361_v58  ;;  %v416_v7 = vsel %vm4182_vm4, %v411_v51, %v415_v33  ;;  %v421_v8 = vrot.slane %v420_v53, 4  ;;  %v1378_v9 = vrot.slane %v1376_v57, 4  ;;  %v4380_v51 = vld [vmem:[%s4137_s13 + $0x50] sm:$0x1] }
  0x46   : > { %v1369_v16 = vor.u32 %v1368_v59, %v1365_v49  ;;  %v1384_v18 = vrot.slane %v1382_v3, 5  ;;  %v428_v21 = vshrl.u32 %v4352_v40, 16  ;;  %v431_v5 = vshll.u32 %v4352_v40, 16  ;;  %v4384_v59 = vld [vmem:[%s4137_s13 + $0x54] sm:$0xf] }
  0x47   : > { %3677 = vmatmul.mubr.msk.bf16.gmra.mrb[4].mxu0 %vm501_vm1, %v3305_v6  ;;  %v426_v19 = vsel %vm4182_vm4, %v421_v8, %v425_v42  ;;  %v1379_v26 = vor.u32 %v1378_v9, %v1374_v2  ;;  %v437_v33 = vshll.u32 %v4357_v48, 16  ;;  %v441_v36 = vshrl.u32 %v4357_v48, 16  ;;  %v4390_v8 = vld [vmem:[%s4137_s13 + $0x58] sm:$0xf] }
  0x48   : > { %v3190_v38 = vcombine.low %v416_v7, %v426_v19  ;;  %v1370_v41 = vrot.slane %v1369_v16, 4  ;;  %v430_v43 = vrot.slane %v428_v21, 4  ;;  %v433_v46 = vrot.slane %v431_v5, 5 }
  0x49   : > { %v1380_v53 = vrot.slane %v1379_v26, 4  ;;  %v439_v49 = vrot.slane %v437_v33, 5  ;;  %v443_v57 = vrot.slane %v441_v36, 4  ;;  %v447_v58 = vshll.u32 %v4364_v4, 16 }
  0x4a   : > { %3609 = vmatmul.mubr.msk.bf16.gmra.mrb[8].mxu1 %vm501_vm1, %v3190_v38  ;;  %v1375_v42 = vsel %vm4182_vm4, %v1370_v41, %v1374_v2  ;;  %v434_v3 = vor.u32 %v433_v46, %v430_v43  ;;  %v1387_v6 = vshrl.u32 %v3292_v15, 16  ;;  %v1390_v7 = vshll.u32 %v3292_v15, 16  ;;  %v4396_v38 = vld [vmem:[%s4137_s13 + $0x5c] sm:$0x1]  ;;  %v3295_v46 = vld [vmem:[%s4137_s13 + $0x54] sm:$0xf] }
  0x4b   : > { %v1385_v9 = vsel %vm4182_vm4, %v1380_v53, %v1384_v18  ;;  %v444_v16 = vor.u32 %v443_v57, %v439_v49  ;;  %v449_v21 = vrot.slane %v447_v58, 5  ;;  %v1396_v5 = vshll.u32 %v4372_v22, 16  ;;  %5118 = vst [vmem:[#allocation7_spill] sm:$0xff] %v4396_v38 }
  0x4c   : > { %v3306_v19 = vcombine.low %v1375_v42, %v1385_v9  ;;  %v435_v26 = vrot.slane %v434_v3, 4  ;;  %v1389_v33 = vrot.slane %v1387_v6, 4  ;;  %v1392_v36 = vrot.slane %v1390_v7, 5  ;;  %v4407_v42 = vld [vmem:[%s4137_s13 + $0x58] sm:$0xf] }
  0x4d   : > { %v445_v2 = vrot.slane %v444_v16, 4  ;;  %v1398_v41 = vrot.slane %v1396_v5, 5  ;;  %v1400_v15 = vshrl.u32 %v4372_v22, 16  ;;  %v1406_v43 = vshll.u32 %v4380_v51, 16 }
  0x4e   : > { %3680 = vmatprep.mubr.msk.bf16.mxu0 %vm501_vm1, %v3306_v19  ;;  %v440_v18 = vsel %vm4182_vm4, %v435_v26, %v439_v49  ;;  %v1393_v53 = vor.u32 %v1392_v36, %v1389_v33  ;;  %v452_v57 = vshrl.u32 %v4384_v59, 16  ;;  %v455_v58 = vshll.u32 %v4384_v59, 16  ;;  %v4413_v49 = vld [vmem:[%s4137_s13 + $0x5c] sm:$0x1] }
  0x4f   : > { %v450_v3 = vsel %vm4182_vm4, %v445_v2, %v449_v21  ;;  %v1402_v6 = vrot.slane %v1400_v15, 4  ;;  %v1408_v7 = vrot.slane %v1406_v43, 5  ;;  %v461_v9 = vshll.u32 %v4390_v8, 16 }
  0x50   : > { %v3191_v16 = vcombine.low %v440_v18, %v450_v3  ;;  %v1394_v5 = vrot.slane %v1393_v53, 4  ;;  %v454_v19 = vrot.slane %v452_v57, 4  ;;  %v457_v20 = vrot.slane %v455_v58, 5  ;;  %v3298_v18 = vld [vmem:[%s4137_s13 + $0x60] sm:$0xf] }
  0x51   : > { %v1403_v26 = vor.u32 %v1402_v6, %v1398_v41  ;;  %v463_v33 = vrot.slane %v461_v9, 5  ;;  %v465_v36 = vshrl.u32 %v4390_v8, 16  ;;  %v471_v1 = vshll.u32 %v4396_v38, 16 }
  0x52   : > { %3612 = vmatprep.mubr.msk.bf16.mxu1 %vm501_vm1, %v3191_v16  ;;  %v1399_v21 = vsel %vm4182_vm4, %v1394_v5, %v1398_v41  ;;  %v458_v2 = vor.u32 %v457_v20, %v454_v19  ;;  %v1411_v15 = vshrl.u32 %v3295_v46, 16  ;;  %v1414_v43 = vshll.u32 %v3295_v46, 16  ;;  %v4427_v19 = vld [vmem:[%s4137_s13 + $0x64] sm:$0xf] }
  0x53   : > { %v1404_v53 = vrot.slane %v1403_v26, 4  ;;  %v467_v57 = vrot.slane %v465_v36, 4  ;;  %v473_v58 = vrot.slane %v471_v1, 5  ;;  %v1420_v3 = vshll.u32 %v4407_v42, 16 }
  0x54   : > { %v459_v6 = vrot.slane %v458_v2, 4  ;;  %v1413_v9 = vrot.slane %v1411_v15, 4  ;;  %v1416_v60 = vrot.slane %v1414_v43, 5  ;;  %v1424_v16 = vshrl.u32 %v4407_v42, 16  ;;  %v4432_v15 = vld [vmem:[%s4137_s13 + $0x68] sm:$0x1] }
  0x55   : > { %v1409_v41 = vsel %vm4182_vm4, %v1404_v53, %v1408_v7  ;;  %v468_v20 = vor.u32 %v467_v57, %v463_v33  ;;  %v1422_v5 = vrot.slane %v1420_v3, 5  ;;  %v1430_v46 = vshll.u32 %v4413_v49, 16 }
  0x56   : > { %v3307_v26 = vcombine.low %v1399_v21, %v1409_v41  ;;  %v464_v1 = vsel %vm4182_vm4, %v459_v6, %v463_v33  ;;  %v1417_v36 = vor.u32 %v1416_v60, %v1413_v9  ;;  %v1426_v2 = vrot.slane %v1424_v16, 4 }
  0x57   : > { %v469_v43 = vrot.slane %v468_v20, 4  ;;  %v1432_v10 = vrot.slane %v1430_v46, 5  ;;  %v1435_v38 = vshrl.u32 %v3298_v18, 16  ;;  %v1438_v4 = vshll.u32 %v3298_v18, 16 }
  0x58   : > { %3681 = vmatmul.mubr.msk.bf16.gmra.mrb[8].mxu0 %vm501_vm1, %v3307_v26  ;;  %v1418_v7 = vrot.slane %v1417_v36, 4  ;;  %v1427_v53 = vor.u32 %v1426_v2, %v1422_v5  ;;  %v1444_v57 = vshll.u32 %v4427_v19, 16  ;;  %v1448_v21 = vshrl.u32 %v4427_v19, 16 }
  0x59   : > { %v474_v33 = vsel %vm4182_vm4, %v469_v43, %v473_v58  ;;  %v1437_v60 = vrot.slane %v1435_v38, 4  ;;  %v1440_v3 = vrot.slane %v1438_v4, 5  ;;  %v1454_v6 = vshll.u32 %v4432_v15, 16 }
  0x5a   : > { %v3192_v9 = vcombine.low %v464_v1, %v474_v33  ;;  %v1423_v18 = vsel %vm4182_vm4, %v1418_v7, %v1422_v5  ;;  %v1428_v16 = vrot.slane %v1427_v53, 4  ;;  %v1446_v41 = vrot.slane %v1444_v57, 5  ;;  %v3319_v53 = vld [vmem:[%s4137_s13 + $0x18] sm:$0xe] }
  0x5b   : > { %v1441_v20 = vor.u32 %v1440_v3, %v1437_v60  ;;  %v1450_v46 = vrot.slane %v1448_v21, 4  ;;  %v3202_v26 = vcombine.low %v4168_v25, %v4171_v27  ;;  %v3326_v38 = vrot.slane %v3318_v62, 9  ;;  %v3320_v21 = vld [vmem:[%s4137_s13 + $0x24] sm:$0xe] }
  0x5c   : > { %3613 = vmatmul.mubr.msk.bf16.gmra.mrb[12].mxu1 %vm501_vm1, %v3192_v9  ;;  %v1433_v4 = vsel %vm4182_vm4, %v1428_v16, %v1432_v10  ;;  %v1658_v5 = vrot.slane %v4192_v44, 5  ;;  %v1661_v1 = vrot.slane %v4196_v47, 5  ;;  %v5121_v25 = vcombine.low %v4149_v11, %v4152_v12 }
  0x5d   : > { %v3308_v36 = vcombine.low %v1423_v18, %v1433_v4  ;;  %v1442_v2 = vrot.slane %v1441_v20, 4  ;;  %v1451_v43 = vor.u32 %v1450_v46, %v1446_v41  ;;  %v1456_v7 = vrot.slane %v1454_v6, 5 }
  0x5e   : > { %3618 = vmatprep.mubr.msk.bf16.mxu1 %vm501_vm1, %v5121_v25  ;;  %v1659_v57 = vsel %vm4447_vm7, %v3326_v38, %v1658_v5  ;;  %v1660_v10 = vrot.slane %v1658_v5, 4  ;;  %v1665_v62 = vrot.slane %v4226_v24, 5  ;;  %v3203_v33 = vcombine.low %v4204_v54, %v4210_v63  ;;  %v3322_v38 = vld [vmem:[%s4137_s13 + $0x3c] sm:$0xe] }
  0x5f   : > { %3684 = vmatprep.mubr.msk.bf16.mxu0 %vm501_vm1, %v3308_v36  ;;  %v1447_v44 = vsel %vm4182_vm4, %v1442_v2, %v1446_v41  ;;  %v1452_v47 = vrot.slane %v1451_v43, 4  ;;  %v3327_v60 = vrot.slane %v3319_v53, 9  ;;  %v1668_v3 = vrot.slane %v4238_v37, 5  ;;  %v3321_v37 = vld [vmem:[%s4137_s13 + $0x30] sm:$0xe] }
  0x60   : > { %v1662_v11 = vsel %vm4447_vm7, %v1660_v10, %v1661_v1  ;;  %v1667_v9 = vrot.slane %v1665_v62, 4  ;;  %v1672_v18 = vrot.slane %v4267_v14, 5  ;;  %v3328_v41 = vrot.slane %v3320_v21, 9 }
  0x61   : > { %v1457_v24 = vsel %vm4182_vm4, %v1452_v47, %v1456_v7  ;;  %v3335_v6 = vcombine.low %v1659_v57, %v1662_v11  ;;  %v1675_v20 = vrot.slane %v4274_v30, 5  ;;  %v1679_v4 = vrot.slane %v4311_v17, 5  ;;  %v3324_v11 = vld [vmem:[%s4137_s13 + $0x54] sm:$0xe] }
  0x62   : > { %v3309_v16 = vcombine.low %v1447_v44, %v1457_v24  ;;  %v1674_v46 = vrot.slane %v1672_v18, 4  ;;  %v925_v54 = vsel %vm526_vm0, %v4232_v32, 0  ;;  %v1666_v14 = vsel %vm4447_vm7, %v3327_v60, %v1665_v62 }
  0x63   : > { %v1669_v30 = vsel %vm4447_vm7, %v1667_v9, %v1668_v3  ;;  %v1965_v17 = vsel %vm526_vm0, %v4286_v50, 0  ;;  %v1673_v32 = vsel %vm4447_vm7, %v3328_v41, %v1672_v18  ;;  %v1686_v5 = vrot.slane %v4343_v39, 5  ;;  %v791_v50 = vld [vmem:[%s4137_s13] sm:$0xe]  ;;  %v3323_v39 = vld [vmem:[%s4137_s13 + $0x48] sm:$0xe] }
  0x64   : > { %3685 = vmatmul.mubr.msk.bf16.gmra.mrb[12].mxu0 %vm501_vm1, %v3309_v16  ;;  %3619 = vmatmul.mubr.msk.bf16.vlgmr.msra.gmra.mrb[0].mxu1 %vm501_vm1, %v3202_v26  ;;  %v1676_v26 = vsel %vm4447_vm7, %v1674_v46, %v1675_v20  ;;  %v820_v1 = vrot.slane %v4152_v12, 5  ;;  %v823_v36 = vrot.slane %v4155_v13, 5  ;;  %v3329_v25 = vrot.slane %v3321_v37, 9  ;;  %v4546_v16 = vld [vmem:[%s4137_s13 + $0x60] sm:$0xe] }
  0x65   : > { %3690 = vmatprep.mubr.msk.bf16.mxu0 %vm501_vm1, %v3335_v6  ;;  %3622 = vmatprep.mubr.msk.bf16.mxu1 %vm501_vm1, %v3203_v33  ;;  %v1681_v2 = vrot.slane %v1679_v4, 4  ;;  %v1682_v43 = vrot.slane %v4316_v29, 5  ;;  %v827_v7 = vrot.slane %v4171_v27, 5  ;;  %v3336_v53 = vcombine.low %v1666_v14, %v1669_v30  ;;  %v792_v33 = vld [vmem:[%s4137_s13 + $0xc] sm:$0xe] }
  0x66   : > { %3635 = vmatpush3.bf16.msra.mxu1 %v925_v54  ;;  %v3204_v57 = vcombine.low %v4242_v45, %v4248_v52  ;;  %v1693_v12 = vrot.slane %v4372_v22, 5  ;;  %v830_v13 = vrot.slane %v4174_v28, 5  ;;  %v3337_v10 = vcombine.low %v1673_v32, %v1676_v26  ;;  %v4515_v45 = vld [vmem:[%s5100_s1 + $0xe] sm:$0x3]  ;;  %v795_v37 = vld [vmem:[%s4137_s13 + $0x30] sm:$0xe] }
  0x67   : > { %3930 = vmatprep.subr.msk.bf16.mxu1 %vm526_vm0, %v4108_v0  ;;  %v3205_v29 = vcombine.low %v4278_v34, %v4290_v56  ;;  %v3330_v62 = vrot.slane %v3322_v38, 9  ;;  %v1688_v44 = vrot.slane %v1686_v5, 4  ;;  %v1689_v0 = vrot.slane %v4349_v23, 5 }
  0x68   : > { %v3217_v27 = vrot.slane %v791_v50, 9  ;;  %v822_v47 = vrot.slane %v820_v1, 4  ;;  %v1680_v22 = vsel %vm4447_vm7, %v3329_v25, %v1679_v4  ;;  %v1683_v28 = vsel %vm4447_vm7, %v1681_v2, %v1682_v43 }
  0x69   : > { %v3331_v21 = vrot.slane %v3323_v39, 9  ;;  %v1696_v34 = vrot.slane %v4380_v51, 5  ;;  %v1695_v23 = vrot.slane %v1693_v12, 4  ;;  %v1700_v60 = vrot.slane %v4407_v42, 5 }
  0x6a   : > { %v4529_v3 = vsel %vm4447_vm7, %v3217_v27, %v820_v1  ;;  %v4533_v24 = vsel %vm4447_vm7, %v822_v47, %v823_v36  ;;  %v3206_v51 = vcombine.low %v4319_v31, %v4327_v55  ;;  %v1687_v6 = vsel %vm4447_vm7, %v3330_v62, %v1686_v5  ;;  %v793_v47 = vld [vmem:[%s4137_s13 + $0x18] sm:$0xe] }
  0x6b   : > { %v3226_v42 = vcombine.low %v4529_v3, %v4533_v24  ;;  %v1690_v9 = vsel %vm4447_vm7, %v1688_v44, %v1689_v0  ;;  %v3332_v18 = vrot.slane %v3324_v11, 9  ;;  %v3218_v41 = vrot.slane %v792_v33, 9  ;;  %v5123_v0 = vld [vmem:[#allocation6_spill] sm:$0xff]  ;;  %v5124_v33 = vld [vmem:[#allocation7_spill] sm:$0xff]  ;;  %v3991_v24 = vld [vmem:[%s4137_s13 + $0x18] sm:$0xff]  }
  0x6c   : > { %3691 = vmatmul.mubr.msk.bf16.vlgmr.msra.gmra.mrb[0].mxu0 %vm501_vm1, %v3336_v53  ;;  %3623 = vmatmul.mubr.msk.bf16.gmra.mrb[4].mxu1 %vm501_vm1, %v3204_v57  ;;  %v829_v20 = vrot.slane %v827_v7, 4  ;;  %v3338_v31 = vcombine.low %v1680_v22, %v1683_v28  ;;  %v3207_v46 = vcombine.low %v4352_v40, %v4357_v48  ;;  %v1694_v4 = vsel %vm4447_vm7, %v3331_v21, %v1693_v12  ;;  %v796_v40 = vld [vmem:[%s4137_s13 + $0x3c] sm:$0xe]  ;;  %v797_v53 = vld [vmem:[%s4137_s13 + $0x48] sm:$0xe] }
  0x6d   : > { %3707 = vmatpush3.bf16.msra.mxu0 %v1965_v17  ;;  %3694 = vmatprep.mubr.msk.bf16.mxu0 %vm501_vm1, %v3337_v10  ;;  %v1703_v54 = vrot.slane %v4413_v49, 5  ;;  %v1697_v14 = vsel %vm4447_vm7, %v1695_v23, %v1696_v34  ;;  %v1702_v30 = vrot.slane %v1700_v60, 4  ;;  %v4560_v17 = vsel %vm4447_vm7, %v3218_v41, %v827_v7  ;;  %v5122_v10 = vld [vmem:[#allocation5_spill] sm:$0xff] }
  0x6e   : > { %3626 = vmatprep.mubr.msk.bf16.mxu1 %vm501_vm1, %v3205_v29  ;;  %3934 = vmatprep.subr.msk.bf16.mxu0 %vm526_vm0, %v4515_v45  ;;  %v4564_v32 = vsel %vm4447_vm7, %v829_v20, %v830_v13  ;;  %v3339_v26 = vcombine.low %v1687_v6, %v1690_v9  ;;  %v3208_v38 = vcombine.low %v4384_v59, %v4390_v8  ;;  %v3333_v49 = vrot.slane %v4546_v16, 9  ;;  %v5125_v16 = vld [vmem:[#allocation3_spill] sm:$0xff] }
  0x6f   : > { %v3227_v5 = vcombine.low %v4560_v17, %v4564_v32  ;;  %v1701_v1 = vsel %vm4447_vm7, %v3332_v18, %v1700_v60  ;;  %v1707_v36 = vrot.slane %v4427_v19, 5  ;;  %v3221_v25 = vrot.slane %v795_v37, 9  ;;  %v3993_v17 = vld [vmem:[%s4137_s13 + $0x30] sm:$0xff]   ;;  %v4670_v32 = vld [vmem:[%s4137_s13 + $0x1c] sm:$0xf] }
  0x70   : > { %v848_v2 = vrot.slane %v4290_v56, 5  ;;  %v3340_v43 = vcombine.low %v1694_v4, %v1697_v14  ;;  %v851_v50 = vrot.slane %v4299_v61, 5  ;;  %v3222_v7 = vrot.slane %v796_v40, 9  ;;  %v798_v61 = vld [vmem:[%s4137_s13 + $0x54] sm:$0xe] }
  0x71   : > { %v855_v59 = vrot.slane %v4327_v55, 5  ;;  %v1704_v57 = vsel %vm4447_vm7, %v1702_v30, %v1703_v54  ;;  %v1710_v19 = vrot.slane %v4432_v15, 5  ;;  %v834_v55 = vrot.slane %v4210_v63, 5 }
  0x72   : > { %v4586_v56 = vsel %vm4447_vm7, %v3221_v25, %v848_v2  ;;  %v850_v39 = vrot.slane %v848_v2, 4  ;;  %v858_v29 = vrot.slane %v5122_v10, 5  ;;  %v3223_v62 = vrot.slane %v797_v53, 9  ;;  %v5127_v2 = vld [vmem:[#allocation2_spill] sm:$0xff] }
  0x73   : > { %v4594_v12 = vsel %vm4447_vm7, %v3222_v7, %v855_v59  ;;  %v857_v13 = vrot.slane %v855_v59, 4  ;;  %v862_v44 = vrot.slane %v4357_v48, 5  ;;  %v865_v27 = vrot.slane %v5123_v0, 5 }
  0x74   : > { %3695 = vmatmul.mubr.msk.bf16.gmra.mrb[4].mxu0 %vm501_vm1, %v3338_v31  ;;  %3627 = vmatmul.mubr.msk.bf16.gmra.mrb[8].mxu1 %vm501_vm1, %v3206_v51  ;;  %v4599_v15 = vsel %vm4447_vm7, %v850_v39, %v851_v50  ;;  %v3224_v28 = vrot.slane %v798_v61, 9  ;;  %v869_v21 = vrot.slane %v4390_v8, 5  ;;  %v872_v23 = vrot.slane %v5124_v33, 5  ;;  %v3992_v50 = vld [vmem:[%s4137_s13 + $0x24] sm:$0xff]  }
  0x75   : > { %3698 = vmatprep.mubr.msk.bf16.mxu0 %vm501_vm1, %v3339_v26  ;;  %3630 = vmatprep.mubr.msk.bf16.mxu1 %vm501_vm1, %v3207_v46  ;;  %v3230_v63 = vcombine.low %v4586_v56, %v4599_v15  ;;  %v4608_v22 = vsel %vm4447_vm7, %v857_v13, %v858_v29  ;;  %v4615_v11 = vsel %vm4447_vm7, %v3223_v62, %v862_v44  ;;  %v864_v48 = vrot.slane %v862_v44, 4  ;;  %v794_v26 = vld [vmem:[%s4137_s13 + $0x24] sm:$0xe]  ;;  %v4681_v56 = vld [vmem:[%s4137_s13 + $0x28] sm:$0xf]  ;;  %v3994_v62 = vld [vmem:[%s4137_s13 + $0x3c] sm:$0xff]  }
  0x76   : > { %v3231_v34 = vcombine.low %v4594_v12, %v4608_v22  ;;  %v3341_v60 = vcombine.low %v1701_v1, %v1704_v57  ;;  %v1709_v51 = vrot.slane %v1707_v36, 4  ;;  %v4620_v6 = vsel %vm4447_vm7, %v3224_v28, %v869_v21  ;;  %v5126_v1 = vld [vmem:[#allocation4_spill] sm:$0xff] }
  0x77   : > { %v871_v9 = vrot.slane %v869_v21, 4  ;;  %v3219_v18 = vrot.slane %v793_v47, 9  ;;  %v836_v8 = vrot.slane %v834_v55, 4  ;;  %v837_v41 = vrot.slane %v5125_v16, 5  ;;  %v4677_v57 = vld [vmem:[%s5100_s1 + $0x10] sm:$0x3] }
  0x78   : > { %v4625_v20 = vsel %vm4447_vm7, %v864_v48, %v865_v27  ;;  %v1708_v54 = vsel %vm4447_vm7, %v3333_v49, %v1707_v36  ;;  %v1711_v37 = vsel %vm4447_vm7, %v1709_v51, %v1710_v19  ;;  %v841_v14 = vrot.slane %v4248_v52, 5  ;;  %v3389_v19 = vld [vmem:[%s4137_s13 + $0x24] sm:$0xf]  ;;  %v3995_v27 = vld [vmem:[%s4137_s13 + $0x48] sm:$0xff]   ;;  %v4698_v47 = vld [vmem:[%s4137_s13 + $0x20] sm:$0x1] }
  0x79   : > { %v3232_v31 = vcombine.low %v4615_v11, %v4625_v20  ;;  %v4631_v46 = vsel %vm4447_vm7, %v871_v9, %v872_v23  ;;  %v835_v30 = vsel %vm4447_vm7, %v3219_v18, %v834_v55  ;;  %v838_v40 = vsel %vm4447_vm7, %v836_v8, %v837_v41  ;;  %v4707_v51 = vld [vmem:[%s4137_s13 + $0x2c] sm:$0x1]  ;;  %v4733_v11 = vld [vmem:[%s4137_s13 + $0x40] sm:$0xf] }
  0x7a   : > { %v3233_v4 = vcombine.low %v4620_v6, %v4631_v46  ;;  %v3342_v3 = vcombine.low %v1708_v54, %v1711_v37  ;;  %v843_v49 = vrot.slane %v841_v14, 4  ;;  %v844_v36 = vrot.slane %v5126_v1, 5 }
  0x7b   : > { %v2347_v53 = vsel %vm526_vm0, %v4515_v45, 0  ;;  %v2114_v39 = vshll.u32 %v4670_v32, 16  ;;  %v2118_v61 = vshrl.u32 %v4670_v32, 16  ;;  %v2129_v13 = vshrl.u32 %v3389_v19, 16 }
  0x7c   : > { %3699 = vmatmul.mubr.msk.bf16.gmra.mrb[8].mxu0 %vm501_vm1, %v3340_v43  ;;  %3631 = vmatmul.mubr.msk.bf16.gmra.mrb[12].mxu1 %vm501_vm1, %v3208_v38  ;;  %v3220_v38 = vrot.slane %v794_v26, 9  ;;  %v845_v25 = vsel %vm4447_vm7, %v843_v49, %v844_v36  ;;  %v3386_v43 = vld [vmem:[%s4137_s13 + $0x18] sm:$0xf]  ;;  %v2132_v10 = vshll.u32 %v3389_v19, 16  ;;  %v2138_v29 = vshll.u32 %v4681_v56, 16  ;;  %v3998_v26 = vld [vmem:[%s4137_s13 + $0x3c] sm:$0xff]  }
  0x7d   : > { %3702 = vmatprep.mubr.msk.bf16.mxu0 %vm501_vm1, %v3341_v60  ;;  %3636 = vmatprep.mubr.msk.bf16.mxu1 %vm501_vm1, %v3226_v42  ;;  %v3228_v42 = vcombine.low %v835_v30, %v838_v40  ;;  %v2108_v59 = vshll.u32 %v3386_v43, 16  ;;  %v2142_v15 = vshrl.u32 %v4681_v56, 16  ;;  %v4694_v44 = vrot.slane %v2114_v39, 5  ;;  %v4704_v60 = vld [vmem:[%s4137_s13 + $0x34] sm:$0xf]  ;;  %v3997_v40 = vld [vmem:[%s4137_s13 + $0x60] sm:$0xff]  }
  0x7e   : > { %v842_v52 = vsel %vm4447_vm7, %v3220_v38, %v841_v14  ;;  %v2120_v0 = vrot.slane %v2118_v61, 4  ;;  %v2131_v21 = vrot.slane %v2129_v13, 4  ;;  %v2134_v48 = vrot.slane %v2132_v10, 5  ;;  %v3395_v30 = vld [vmem:[%s4137_s13 + $0x3c] sm:$0xf]  ;;  %v3999_v13 = vld [vmem:[%s4137_s13 + $0x6c] sm:$0xff]  }
  0x7f   : > { %v3229_v7 = vcombine.low %v842_v52, %v845_v25  ;;  %v2110_v55 = vrot.slane %v2108_v59, 5  ;;  %v4701_v33 = vrot.slane %v2138_v29, 5  ;;  %v2144_v23 = vrot.slane %v2142_v15, 4  ;;  %v3398_v38 = vld [vmem:[%s4137_s13 + $0x48] sm:$0xf] }
  0x80   : > { %v2121_v9 = vor.u32 %v2120_v0, %v4694_v44  ;;  %v2124_v18 = vshll.u32 %v4698_v47, 16  ;;  %v2162_v12 = vshll.u32 %v4704_v60, 16  ;;  %v2166_v22 = vshrl.u32 %v4704_v60, 16  ;;  %v4739_v25 = vld [vmem:[%s4137_s13 + $0x4c] sm:$0xf] }
  0x81   : > { %v2135_v54 = vor.u32 %v2134_v48, %v2131_v21  ;;  %v2145_v37 = vor.u32 %v2144_v23, %v4701_v33  ;;  %v2148_v14 = vshll.u32 %v4707_v51, 16  ;;  %v2177_v36 = vshrl.u32 %v3395_v30, 16  ;;  %v4766_v15 = vld [vmem:[%s4137_s13 + $0x44] sm:$0x1]  ;;  %v4771_v0 = vld [vmem:[%s4137_s13 + $0x50] sm:$0x1] }
  0x82   : > { %v2122_v20 = vrot.slane %v2121_v9, 4  ;;  %v4736_v49 = vrot.slane %v2162_v12, 5  ;;  %v2168_v1 = vrot.slane %v2166_v22, 4  ;;  %v2180_v52 = vshll.u32 %v3395_v30, 16  ;;  %v3401_v9 = vld [vmem:[%s4137_s13 + $0x54] sm:$0xf] }
  0x83   : > { %v2201_v59 = vshrl.u32 %v3398_v38, 16  ;;  %v2210_v61 = vshll.u32 %v4739_v25, 16  ;;  %v2179_v46 = vrot.slane %v2177_v36, 4  ;;  %v2196_v22 = vshll.u32 %v4766_v15, 16 }
  0x84   : > { %3703 = vmatmul.mubr.msk.bf16.gmra.mrb[12].mxu0 %vm501_vm1, %v3342_v3  ;;  %3637 = vmatmul.mubr.msk.bf16.vlgmr.msra.gmra.mrb[0].mxu1 %vm501_vm1, %v3227_v5  ;;  %v2105_v5 = vshrl.u32 %v3386_v43, 16  ;;  %v4730_v3 = vld [vmem:[%s4137_s13 + $0x38] sm:$0x1]  ;;  %v2136_v43 = vrot.slane %v2135_v54, 4  ;;  %v2169_v6 = vor.u32 %v2168_v1, %v4736_v49  ;;  %v2225_v30 = vshrl.u32 %v3401_v9, 16 }
  0x85   : > { %3708 = vmatprep.mubr.msk.bf16.mxu0 %vm501_vm1, %v3991_v24  ;;  %3640 = vmatprep.mubr.msk.bf16.mxu1 %vm501_vm1, %v3228_v42  ;;  %v2172_v39 = vshll.u32 %v4730_v3, 16  ;;  %v4774_v23 = vrot.slane %v2210_v61, 5  ;;  %v2506_v35 = vrot.slane %v4707_v51, 5 }
  0x86   : > { %3797 = vmatpush3.bf16.msra.mxu1 %v5127_v2  ;;  %v2107_v45 = vrot.slane %v2105_v5, 4  ;;  %v2190_v5 = vshrl.u32 %v4733_v11, 16  ;;  %v2141_v10 = vsel %vm4182_vm4, %v2136_v43, %v4701_v33 }
  0x87   : > { %v2174_v48 = vrot.slane %v2172_v39, 5 }
  0x88   : > { %v2111_v28 = vor.u32 %v2110_v55, %v2107_v45  ;;  %v2214_v45 = vshrl.u32 %v4739_v25, 16 }
  0x8a   : > { %v2112_v41 = vrot.slane %v2111_v28, 4  ;;  %v2216_v33 = vrot.slane %v2214_v45, 4 }
  0x8c   : > { %3709 = vmatmul.mubr.msk.bf16.vlgmr.msra.gmra.mrb[0].mxu0 %vm501_vm1, %v3992_v50  ;;  %3641 = vmatmul.mubr.msk.bf16.gmra.mrb[4].mxu1 %vm501_vm1, %v3229_v7  ;;  %v2117_v2 = vsel %vm4182_vm4, %v2112_v41, %v4694_v44  ;;  %v2146_v50 = vrot.slane %v2145_v37, 4  ;;  %v2150_v7 = vrot.slane %v2148_v14, 5  ;;  %v2192_v44 = vrot.slane %v2190_v5, 4 }
  0x8d   : > { %3725 = vmatpush3.bf16.msra.mxu0 %v2347_v53  ;;  %3712 = vmatprep.mubr.msk.bf16.mxu0 %vm501_vm1, %v3993_v17  ;;  %v2186_v17 = vshll.u32 %v4733_v11, 16  ;;  %v2204_v53 = vshll.u32 %v3398_v38, 16  ;;  %v2220_v14 = vshll.u32 %v4771_v0, 16 }
  0x8e   : > { %3644 = vmatprep.mubr.msk.bf16.mxu1 %vm501_vm1, %v3230_v63  ;;  %3935 = vmatprep.subr.msk.bf16.mxu0 %vm526_vm0, %v4677_v57  ;;  %v3392_v63 = vld [vmem:[%s4137_s13 + $0x30] sm:$0xf]  ;;  %v2151_v29 = vsel %vm4182_vm4, %v2146_v50, %v2150_v7 }
  0x8f   : > { %v2153_v8 = vshrl.u32 %v3392_v63, 16  ;;  %v2156_v16 = vshll.u32 %v3392_v63, 16  ;;  %v2206_v28 = vrot.slane %v2204_v53, 5  ;;  %v4000_v63 = vld [vmem:[%s4137_s13 + $0x48] sm:$0xff]   ;;  %v3412_v41 = vcombine.low %v2141_v10, %v2151_v29 }
  0x90   : > { %v2227_v53 = vrot.slane %v2225_v30, 4 }
  0x91   : > { %v2155_v24 = vrot.slane %v2153_v8, 4  ;;  %v2158_v42 = vrot.slane %v2156_v16, 5  ;;  %v2170_v16 = vrot.slane %v2169_v6, 4 }
  0x93   : > { %v2159_v55 = vor.u32 %v2158_v42, %v2155_v24  ;;  %v2175_v1 = vsel %vm4182_vm4, %v2170_v16, %v2174_v48 }
  0x94   : > { %3713 = vmatmul.mubr.msk.bf16.gmra.mrb[4].mxu0 %vm501_vm1, %v3994_v62  ;;  %3645 = vmatmul.mubr.msk.bf16.gmra.mrb[8].mxu1 %vm501_vm1, %v3231_v34  ;;  %v3996_v34 = vld [vmem:[%s4137_s13 + $0x54] sm:$0xff]   ;;  %v4768_v62 = vrot.slane %v2186_v17, 5 }
  0x95   : > { %3716 = vmatprep.mubr.msk.bf16.mxu0 %vm501_vm1, %v3995_v27  ;;  %3648 = vmatprep.mubr.msk.bf16.mxu1 %vm501_vm1, %v3232_v31  ;;  %v2126_v31 = vrot.slane %v2124_v18, 5  ;;  %v2203_v27 = vrot.slane %v2201_v59, 4  ;;  %v4001_v18 = vld [vmem:[%s4137_s13 + $0x54] sm:$0xff]   ;;  %v2160_v8 = vrot.slane %v2159_v55, 4  ;;  %v2222_v59 = vrot.slane %v2220_v14, 5 }
  0x96   : > { %v2193_v54 = vor.u32 %v2192_v44, %v4768_v62  ;;  %v2601_v55 = vsel %vm526_vm0, %v4677_v57, 0 }
  0x97   : > { %v2127_v19 = vsel %vm4182_vm4, %v2122_v20, %v2126_v31  ;;  %v2207_v37 = vor.u32 %v2206_v28, %v2203_v27  ;;  %v2217_v20 = vor.u32 %v2216_v33, %v4774_v23  ;;  %v2228_v31 = vshll.u32 %v3401_v9, 16  ;;  %v4810_v27 = vld [vmem:[%s4137_s13 + $0x70] sm:$0xf] }
  0x98   : > { %v3411_v21 = vcombine.low %v2117_v2, %v2127_v19  ;;  %v2165_v38 = vsel %vm4182_vm4, %v2160_v8, %v4736_v49  ;;  %v2194_v17 = vrot.slane %v2193_v54, 4  ;;  %v4002_v19 = vld [vmem:[%s4137_s13 + $0x60] sm:$0xff]   ;;  %v2286_v16 = vshrl.u32 %v4810_v27, 16 }
  0x99   : > { %v2208_v5 = vrot.slane %v2207_v37, 4  ;;  %v2218_v49 = vrot.slane %v2217_v20, 4  ;;  %v2230_v39 = vrot.slane %v2228_v31, 5  ;;  %v3413_v6 = vcombine.low %v2165_v38, %v2175_v1 }
  0x9b   : > { %v2213_v57 = vsel %vm4182_vm4, %v2208_v5, %v4774_v23  ;;  %v2223_v48 = vsel %vm4182_vm4, %v2218_v49, %v2222_v59  ;;  %v2231_v33 = vor.u32 %v2230_v39, %v2227_v53  ;;  %v2282_v23 = vshll.u32 %v4810_v27, 16 }
  0x9c   : > { %3717 = vmatmul.mubr.msk.bf16.gmra.mrb[8].mxu0 %vm501_vm1, %v3996_v34  ;;  %3649 = vmatmul.mubr.msk.bf16.gmra.mrb[12].mxu1 %vm501_vm1, %v3233_v4  ;;  %v2182_v4 = vrot.slane %v2180_v52, 5  ;;  %v4780_v34 = vld [vmem:[%s4137_s13 + $0x58] sm:$0xf]  ;;  %v2198_v52 = vrot.slane %v2196_v22, 5  ;;  %v3415_v37 = vcombine.low %v2213_v57, %v2223_v48  ;;  %v2496_v53 = vrot.slane %v4670_v32, 5 }
  0x9d   : > { %3720 = vmatprep.mubr.msk.bf16.mxu0 %vm501_vm1, %v3997_v40  ;;  %3662 = vmatprep.mubr.msk.bf16.mxu1 %vm501_vm1, %v3998_v26  ;;  %v3404_v40 = vld [vmem:[%s4137_s13 + $0x60] sm:$0xf]  ;;  %v4786_v26 = vld [vmem:[%s4137_s13 + $0x64] sm:$0xf]  ;;  %v2234_v24 = vshll.u32 %v4780_v34, 16  ;;  %v2238_v42 = vshrl.u32 %v4780_v34, 16 }
  0x9e   : > { %v2183_v12 = vor.u32 %v2182_v4, %v2179_v46  ;;  %v2249_v2 = vshrl.u32 %v3404_v40, 16  ;;  %v2252_v43 = vshll.u32 %v3404_v40, 16  ;;  %v2258_v50 = vshll.u32 %v4786_v26, 16  ;;  %v4806_v46 = vld [vmem:[%s4137_s13 + $0x5c] sm:$0x1] }
  0x9f   : > { %v2262_v7 = vshrl.u32 %v4786_v26, 16  ;;  %v2236_v61 = vrot.slane %v2234_v24, 5  ;;  %v2240_v45 = vrot.slane %v2238_v42, 4  ;;  %v3407_v4 = vld [vmem:[%s4137_s13 + $0x6c] sm:$0xf]  ;;  %v2232_v14 = vrot.slane %v2231_v33, 4 }
  0xa0   : > { %v2184_v36 = vrot.slane %v2183_v12, 4  ;;  %v2254_v10 = vrot.slane %v2252_v43, 5  ;;  %v2260_v29 = vrot.slane %v2258_v50, 5  ;;  %v2276_v8 = vshll.u32 %v3407_v4, 16  ;;  %v3429_v57 = vld [vmem:[%s4137_s13 + $0x30] sm:$0xe] }
  0xa1   : > { %v2264_v44 = vrot.slane %v2262_v7, 4  ;;  %v2241_v9 = vor.u32 %v2240_v45, %v2236_v61  ;;  %v2284_v24 = vrot.slane %v2282_v23, 5  ;;  %v2288_v42 = vrot.slane %v2286_v16, 4 }
  0xa2   : > { %v2189_v28 = vsel %vm4182_vm4, %v2184_v36, %v4768_v62  ;;  %v2244_v62 = vshll.u32 %v4806_v46, 16  ;;  %v2278_v31 = vrot.slane %v2276_v8, 5  ;;  %v2513_v8 = vrot.slane %v4730_v3, 5 }
  0xa3   : > { %v2265_v22 = vor.u32 %v2264_v44, %v2260_v29  ;;  %v2242_v30 = vrot.slane %v2241_v9, 4  ;;  %v2289_v7 = vor.u32 %v2288_v42, %v2284_v24  ;;  %v2517_v16 = vrot.slane %v4733_v11, 5 }
  0xa4   : > { %3721 = vmatmul.mubr.msk.bf16.gmra.mrb[12].mxu0 %vm501_vm1, %v3999_v13  ;;  %3663 = vmatmul.mubr.msk.bf16.vlgmr.msra.gmra.mrb[8].mxu1 %vm501_vm1, %v4000_v63  ;;  %v2251_v13 = vrot.slane %v2249_v2, 4  ;;  %v2199_v63 = vsel %vm4182_vm4, %v2194_v17, %v2198_v52  ;;  %v2246_v40 = vrot.slane %v2244_v62, 5  ;;  %v4833_v52 = vld [vmem:[%s4137_s13 + $0x74] sm:$0x1]  ;;  %v2237_v2 = vsel %vm4182_vm4, %v2232_v14, %v2236_v61 }
  0xa5   : > { %3726 = vmatprep.mubr.msk.bf16.mxu0 %vm501_vm1, %v3411_v21  ;;  %3666 = vmatprep.mubr.msk.bf16.mxu1 %vm501_vm1, %v4001_v18  ;;  %v4821_v21 = vld [vmem:[%s4137_s13 + $0x68] sm:$0x1]  ;;  %v2273_v18 = vshrl.u32 %v3407_v4, 16  ;;  %v3414_v54 = vcombine.low %v2189_v28, %v2199_v63  ;;  %v2266_v1 = vrot.slane %v2265_v22, 4  ;;  %v2292_v17 = vshll.u32 %v4833_v52, 16 }
  0xa6   : > { %v2255_v12 = vor.u32 %v2254_v10, %v2251_v13  ;;  %v2247_v43 = vsel %vm4182_vm4, %v2242_v30, %v2246_v40  ;;  %v2290_v45 = vrot.slane %v2289_v7, 4  ;;  %v2498_v4 = vrot.slane %v2496_v53, 4  ;;  %v3428_v63 = vld [vmem:[%s4137_s13 + $0x24] sm:$0xe]  ;;  %v3430_v22 = vld [vmem:[%s4137_s13 + $0x3c] sm:$0xe] }
  0xa7   : > { %v2275_v20 = vrot.slane %v2273_v18, 4  ;;  %v3416_v49 = vcombine.low %v2237_v2, %v2247_v43  ;;  %v2499_v13 = vrot.slane %v4698_v47, 5  ;;  %v2510_v47 = vrot.slane %v4704_v60, 5 }
  0xa8   : > { %v2256_v38 = vrot.slane %v2255_v12, 4  ;;  %v3436_v9 = vrot.slane %v3428_v63, 9  ;;  %v3437_v18 = vrot.slane %v3429_v57, 9  ;;  %v2524_v3 = vrot.slane %v4739_v25, 5 }
  0xa9   : > { %v2279_v50 = vor.u32 %v2278_v31, %v2275_v20  ;;  %v2500_v28 = vsel %vm4447_vm7, %v2498_v4, %v2499_v13  ;;  %v3438_v14 = vrot.slane %v3430_v22, 9  ;;  %v2519_v30 = vrot.slane %v2517_v16, 4 }
  0xaa   : > { %v2261_v5 = vsel %vm4182_vm4, %v2256_v38, %v2260_v29  ;;  %v2503_v29 = vrot.slane %v4681_v56, 5  ;;  %v2512_v56 = vrot.slane %v2510_v47, 4  ;;  %v2511_v12 = vsel %vm4447_vm7, %v3437_v18, %v2510_v47 }
  0xab   : > { %v2280_v61 = vrot.slane %v2279_v50, 4  ;;  %v2520_v40 = vrot.slane %v4766_v15, 5  ;;  %v2526_v11 = vrot.slane %v2524_v3, 4  ;;  %v2527_v31 = vrot.slane %v4771_v0, 5 }
  0xac   : > { %3727 = vmatmul.mubr.msk.bf16.vlgmr.msra.gmra.mrb[0].mxu0 %vm501_vm1, %v3412_v41  ;;  %3667 = vmatmul.mubr.msk.bf16.gmra.mrb[12].mxu1 %vm501_vm1, %v4002_v19  ;;  %v2268_v41 = vshll.u32 %v4821_v21, 16  ;;  %v3427_v19 = vld [vmem:[%s4137_s13 + $0x18] sm:$0xe]  ;;  %v2505_v62 = vrot.slane %v2503_v29, 4  ;;  %v2504_v60 = vsel %vm4447_vm7, %v3436_v9, %v2503_v29  ;;  %v2514_v51 = vsel %vm4447_vm7, %v2512_v56, %v2513_v8 }
  0xad   : > { %3743 = vmatpush3.bf16.msra.mxu0 %v2601_v55  ;;  %3730 = vmatprep.mubr.msk.bf16.mxu0 %vm501_vm1, %v3413_v6  ;;  %v2294_v55 = vrot.slane %v2292_v17, 5  ;;  %v3435_v6 = vrot.slane %v3427_v19, 9  ;;  %v2285_v10 = vsel %vm4182_vm4, %v2280_v61, %v2284_v24  ;;  %v2518_v25 = vsel %vm4447_vm7, %v3438_v14, %v2517_v16 }
  0xae   : > { %v2270_v36 = vrot.slane %v2268_v41, 5  ;;  %v2507_v23 = vsel %vm4447_vm7, %v2505_v62, %v2506_v35  ;;  %v3431_v41 = vld [vmem:[%s4137_s13 + $0x48] sm:$0xe]  ;;  %v2521_v24 = vsel %vm4447_vm7, %v2519_v30, %v2520_v40  ;;  %v2531_v42 = vrot.slane %v4780_v34, 5 }
  0xaf   : > { %v2295_v32 = vsel %vm4182_vm4, %v2290_v45, %v2294_v55  ;;  %v2497_v44 = vsel %vm4447_vm7, %v3435_v6, %v2496_v53  ;;  %v3439_v20 = vrot.slane %v3431_v41, 9  ;;  %v2528_v15 = vsel %vm4447_vm7, %v2526_v11, %v2527_v31 }
  0xb0   : > { %v2271_v59 = vsel %vm4182_vm4, %v2266_v1, %v2270_v36  ;;  %v3418_v48 = vcombine.low %v2285_v10, %v2295_v32  ;;  %v3444_v33 = vcombine.low %v2497_v44, %v2500_v28  ;;  %v3432_v1 = vld [vmem:[%s4137_s13 + $0x54] sm:$0xe]  ;;  %v2538_v0 = vrot.slane %v4786_v26, 5  ;;  %v3433_v36 = vld [vmem:[%s4137_s13 + $0x60] sm:$0xe] }
  0xb1   : > { %v3417_v39 = vcombine.low %v2261_v5, %v2271_v59  ;;  %v2525_v38 = vsel %vm4447_vm7, %v3439_v20, %v2524_v3  ;;  %v3447_v2 = vcombine.low %v2518_v25, %v2521_v24  ;;  %v3440_v50 = vrot.slane %v3432_v1, 9  ;;  %v2763_v10 = vld [vmem:[%s5102_s3] sm:$0xf]  ;;  %v3470_v32 = vld [vmem:[%s5102_s3 + $0x4] sm:$0xf] }
  0xb2   : > { %v3448_v43 = vcombine.low %v2525_v38, %v2528_v15  ;;  %v2533_v7 = vrot.slane %v2531_v42, 4  ;;  %v2534_v17 = vrot.slane %v4806_v46, 5  ;;  %v3441_v5 = vrot.slane %v3433_v36, 9  ;;  %3936 = vmatprep.subr.msk.bf16.mxu1 %vm2796_vm8, %v2763_v10 }
  0xb3   : > { %v2540_v59 = vrot.slane %v2538_v0, 4  ;;  %v2541_v34 = vrot.slane %v4821_v21, 5  ;;  %v2532_v53 = vsel %vm4447_vm7, %v3440_v50, %v2531_v42  ;;  %v2545_v19 = vrot.slane %v4810_v27, 5 }
  0xb4   : > { %3731 = vmatmul.mubr.msk.bf16.gmra.mrb[4].mxu0 %vm501_vm1, %v3414_v54  ;;  %v3445_v54 = vcombine.low %v2504_v60, %v2507_v23  ;;  %v2535_v26 = vsel %vm4447_vm7, %v2533_v7, %v2534_v17  ;;  %v2548_v6 = vrot.slane %v4833_v52, 5  ;;  %v2798_v52 = vsel %vm2796_vm8, %v2763_v10, 0 }
  0xb5   : > { %3734 = vmatprep.mubr.msk.bf16.mxu0 %vm501_vm1, %v3415_v37  ;;  %v3446_v37 = vcombine.low %v2511_v12, %v2514_v51  ;;  %v2542_v46 = vsel %vm4447_vm7, %v2540_v59, %v2541_v34  ;;  %v3449_v21 = vcombine.low %v2532_v53, %v2535_v26  ;;  %v2547_v55 = vrot.slane %v2545_v19, 4  ;;  %3761 = vmatpush3.bf16.msra.mxu1 %v2798_v52  ;;  %v4934_v12 = vld [vmem:[%s5101_s2] ss:$0 sm:$0xff] }
  0xb6   : > { %3937 = vmatprep.subr.msk.bf16.mxu1 %vm2796_vm8, %v3470_v32  ;;  %v2939_v29 = vsel %vm2796_vm8, %v3470_v32, 0 }
  0xb7   : > { %v2549_v4 = vsel %vm4447_vm7, %v2547_v55, %v2548_v6 }
  0xbc   : > { %3735 = vmatmul.mubr.msk.bf16.gmra.mrb[8].mxu0 %vm501_vm1, %v3416_v49  ;;  %v2539_v49 = vsel %vm4447_vm7, %v3441_v5, %v2538_v0 }
  0xbd   : > { %3738 = vmatprep.mubr.msk.bf16.mxu0 %vm501_vm1, %v3417_v39  ;;  %v3434_v39 = vld [vmem:[%s4137_s13 + $0x6c] sm:$0xe]  ;;  %v3450_v61 = vcombine.low %v2539_v49, %v2542_v46  ;;  %s3178_s13 = sshll.u32 %s5141_s12, 2 }
  0xbe   : > { %v3442_v45 = vrot.slane %v3434_v39, 9  ;;  %s246_s15 = sadd.s32 %s3179_s14, %s3178_s13 }
  0xbf   : > { %s3180_s25 = sshll.u32 %s246_s15, 3 }
  0xc0   : > { %v2546_v27 = vsel %vm4447_vm7, %v3442_v45, %v2545_v19  ;;  %s4987_s28 = scalar_lea.vmem %s5104_s5, %s3180_s25 }
  0xc1   : > { %v3451_v13 = vcombine.low %v2546_v27, %v2549_v4 }
  0xc4   : > { %3739 = vmatmul.mubr.msk.bf16.gmra.mrb[12].mxu0 %vm501_vm1, %v3418_v48 }
  0xc5   : > { %3744 = vmatprep.mubr.msk.bf16.mxu0 %vm501_vm1, %v3444_v33 }
  0xcc   : > { %3745 = vmatmul.mubr.msk.bf16.vlgmr.msra.gmra.mrb[0].mxu0 %vm501_vm1, %v3445_v54 }
  0xcd   : > { %3748 = vmatprep.mubr.msk.bf16.mxu0 %vm501_vm1, %v3446_v37 }
  0xd4   : > { %3749 = vmatmul.mubr.msk.bf16.gmra.mrb[4].mxu0 %vm501_vm1, %v3447_v2 }
  0xd5   : > { %3752 = vmatprep.mubr.msk.bf16.mxu0 %vm501_vm1, %v3448_v43 }
  0xdc   : > { %3753 = vmatmul.mubr.msk.bf16.gmra.mrb[8].mxu0 %vm501_vm1, %v3449_v21 }
  0xdd   : > { %3756 = vmatprep.mubr.msk.bf16.mxu0 %vm501_vm1, %v3450_v61 }
  0xe4   : > { %3757 = vmatmul.mubr.msk.bf16.gmra.mrb[12].mxu0 %vm501_vm1, %v3451_v13 }
 0x157   : > { %v3638_v44 = vpop.f32.mrb[0].mxu1 }
 0x158   : > { %v961_v58 = vpop.f32.mrb[1].mxu1 }
 0x159   : > { %v3639_v28 = vpop.f32.mrb[2].mxu1 }
 0x15a   : > { %v964_v63 = vpop.f32.mrb[3].mxu1 }
 0x15f   : > { %v3642_v47 = vpop.f32.mrb[4].mxu1 }
 0x160   : > { %v977_v57 = vpop.f32.mrb[5].mxu1 }
 0x161   : > { %v3643_v48 = vpop.f32.mrb[6].mxu1 }
 0x162   : > { %v980_v33 = vpop.f32.mrb[7].mxu1 }
 0x177   : > { %v3664_v9 = vpop.f32.mrb[8].mxu1 }
 0x178   : > { %v1195_v62 = vpop.f32.mrb[9].mxu1 }
 0x179   : > { %v3665_v35 = vpop.f32.mrb[10].mxu1 }
 0x17a   : > { %v1198_v18 = vpop.f32.mrb[11].mxu1 }
 0x17f   : > { %v4923_v56 = vpop.f32.mrb[12].mxu1 }
 0x180   : > { %v4925_v8 = vpop.f32.mrb[13].mxu1 }
 0x181   : > { %v4927_v60 = vpop.f32.mrb[14].mxu1 }
 0x182   : > { %v4929_v23 = vpop.f32.mrb[15].mxu1 }
 0x19f   : > { %v3746_v16 = vpop.f32.mrb[0].mxu0 }
 0x1a0   : > { %v3798_v51 = vadd.f32 %v3746_v16, %v3638_v44  ;;  %v2637_v22 = vpop.f32.mrb[1].mxu0 }
 0x1a1   : > { %v3799_v3 = vadd.f32 %v2637_v22, %v961_v58  ;;  %v3747_v41 = vpop.f32.mrb[2].mxu0 }
 0x1a2   : > { %v2725_v54 = vadd.f32 %v3798_v51, %v4934_v12  ;;  %v3800_v37 = vadd.f32 %v3747_v41, %v3639_v28  ;;  %v2640_v14 = vpop.f32.mrb[3].mxu0 }
 0x1a3   : > { %v2723_v30 = vadd.f32 %v3799_v3, %v4934_v12  ;;  %v3801_v40 = vadd.f32 %v2640_v14, %v964_v63 }
 0x1a4   : > { %v2726_v20 = vadd.f32 %v3800_v37, %v4934_v12  ;;  %v2741_v31 = vmax.f32 %v2725_v54, 0.0 }
 0x1a5   : > { %v2724_v11 = vadd.f32 %v3801_v40, %v4934_v12  ;;  %v2739_v24 = vmax.f32 %v2723_v30, 0.0 }
 0x1a6   : > { %v2742_v25 = vmax.f32 %v2726_v20, 0.0 }
 0x1a7   : > { %v2740_v42 = vmax.f32 %v2724_v11, 0.0  ;;  %v3750_v38 = vpop.f32.mrb[4].mxu0 }
 0x1a8   : > { %v4940_v15 = vpack.c.bf16 %v2742_v25, %v2741_v31  ;;  %v3802_v1 = vadd.f32 %v3750_v38, %v3642_v47  ;;  %v2653_v0 = vpop.f32.mrb[5].mxu0 }
 0x1a9   : > { %v2755_v36 = vpack.c.bf16 %v2740_v42, %v2739_v24  ;;  %v3803_v2 = vadd.f32 %v2653_v0, %v977_v57  ;;  %v3751_v43 = vpop.f32.mrb[6].mxu0 }
 0x1aa   : > { %v2729_v50 = vadd.f32 %v3802_v1, %v4934_v12  ;;  %v3804_v7 = vadd.f32 %v3751_v43, %v3643_v48  ;;  %v2656_v17 = vpop.f32.mrb[7].mxu0 }
 0x1ab   : > { %v2727_v5 = vadd.f32 %v3803_v2, %v4934_v12  ;;  %v3805_v59 = vadd.f32 %v2656_v17, %v980_v33  ;;  %3762 = vmatprep.mubr.msk.bf16.mxu1 %vm2771_vm9, %v2755_v36 }
 0x1ac   : > { %v2730_v34 = vadd.f32 %v3804_v7, %v4934_v12  ;;  %3763 = vmatmul.mubr.msk.bf16.vlgmr.msra.gmra.mrb[16].mxu1 %vm2771_vm9, %v4940_v15  ;;  %v2745_v26 = vmax.f32 %v2729_v50, 0.0 }
 0x1ad   : > { %v2728_v53 = vadd.f32 %v3805_v59, %v4934_v12  ;;  %3779 = vmatpush3.bf16.msra.mxu1 %v2939_v29  ;;  %v2743_v49 = vmax.f32 %v2727_v5, 0.0 }
 0x1ae   : > { %v2746_v19 = vmax.f32 %v2730_v34, 0.0 }
 0x1af   : > { %v2744_v46 = vmax.f32 %v2728_v53, 0.0  ;;  %v3754_v39 = vpop.f32.mrb[8].mxu0 }
 0x1b0   : > { %v2758_v21 = vpack.c.bf16 %v2746_v19, %v2745_v26  ;;  %v3806_v61 = vadd.f32 %v3754_v39, %v3664_v9  ;;  %v2669_v45 = vpop.f32.mrb[9].mxu0 }
 0x1b1   : > { %v2757_v55 = vpack.c.bf16 %v2744_v46, %v2743_v49  ;;  %v3807_v6 = vadd.f32 %v2669_v45, %v1195_v62  ;;  %v3755_v27 = vpop.f32.mrb[10].mxu0 }
 0x1b2   : > { %v2733_v4 = vadd.f32 %v3806_v61, %v4934_v12  ;;  %v3808_v13 = vadd.f32 %v3755_v27, %v3665_v35  ;;  %v2672_v10 = vpop.f32.mrb[11].mxu0 }
 0x1b3   : > { %v2731_v52 = vadd.f32 %v3807_v6, %v4934_v12  ;;  %v3809_v32 = vadd.f32 %v2672_v10, %v1198_v18  ;;  %3766 = vmatprep.mubr.msk.bf16.mxu1 %vm2771_vm9, %v2757_v55 }
 0x1b4   : > { %v2734_v29 = vadd.f32 %v3808_v13, %v4934_v12  ;;  %3767 = vmatmul.mubr.msk.bf16.gmra.mrb[20].mxu1 %vm2771_vm9, %v2758_v21  ;;  %v2749_v58 = vmax.f32 %v2733_v4, 0.0 }
 0x1b5   : > { %v2732_v44 = vadd.f32 %v3809_v32, %v4934_v12  ;;  %v2747_v63 = vmax.f32 %v2731_v52, 0.0 }
 0x1b6   : > { %v2750_v28 = vmax.f32 %v2734_v29, 0.0 }
 0x1b7   : > { %v2748_v47 = vmax.f32 %v2732_v44, 0.0  ;;  %v3758_v57 = vpop.f32.mrb[12].mxu0 }
 0x1b8   : > { %v2760_v48 = vpack.c.bf16 %v2750_v28, %v2749_v58  ;;  %v3810_v33 = vadd.f32 %v3758_v57, %v4923_v56  ;;  %v2685_v9 = vpop.f32.mrb[13].mxu0 }
 0x1b9   : > { %v2759_v62 = vpack.c.bf16 %v2748_v47, %v2747_v63  ;;  %v3811_v35 = vadd.f32 %v2685_v9, %v4925_v8  ;;  %v3759_v18 = vpop.f32.mrb[14].mxu0 }
 0x1ba   : > { %v2737_v16 = vadd.f32 %v3810_v33, %v4934_v12  ;;  %v3812_v51 = vadd.f32 %v3759_v18, %v4927_v60  ;;  %v2688_v22 = vpop.f32.mrb[15].mxu0 }
 0x1bb   : > { %v2735_v3 = vadd.f32 %v3811_v35, %v4934_v12  ;;  %v3813_v41 = vadd.f32 %v2688_v22, %v4929_v23  ;;  %3770 = vmatprep.mubr.msk.bf16.mxu1 %vm2771_vm9, %v2759_v62  ;;  %v4981_v23 = vld [vmem:[%s5103_s4] ss:$0 sm:$0xff] }
 0x1bc   : > { %v2738_v54 = vadd.f32 %v3812_v51, %v4934_v12  ;;  %3771 = vmatmul.mubr.msk.bf16.gmra.mrb[24].mxu1 %vm2771_vm9, %v2760_v48  ;;  %v2753_v37 = vmax.f32 %v2737_v16, 0.0 }
 0x1bd   : > { %v2736_v56 = vadd.f32 %v3813_v41, %v4934_v12  ;;  %v2751_v14 = vmax.f32 %v2735_v3, 0.0 }
 0x1be   : > { %v2754_v8 = vmax.f32 %v2738_v54, 0.0 }
 0x1bf   : > { %v2752_v30 = vmax.f32 %v2736_v56, 0.0 }
 0x1c0   : > { %v2762_v40 = vpack.c.bf16 %v2754_v8, %v2753_v37 }
 0x1c1   : > { %v2761_v60 = vpack.c.bf16 %v2752_v30, %v2751_v14 }
 0x1c3   : > { %3774 = vmatprep.mubr.msk.bf16.mxu1 %vm2771_vm9, %v2761_v60 }
 0x1c4   : > { %3775 = vmatmul.mubr.msk.bf16.gmra.mrb[28].mxu1 %vm2771_vm9, %v2762_v40 }
 0x1c5   : > { %3780 = vmatprep.mubr.msk.bf16.mxu1 %vm2771_vm9, %v2755_v36 }
 0x1cc   : > { %3781 = vmatmul.mubr.msk.bf16.vlgmr.msra.gmra.mrb[32].mxu1 %vm2771_vm9, %v4940_v15 }
 0x1cd   : > { %3784 = vmatprep.mubr.msk.bf16.mxu1 %vm2771_vm9, %v2757_v55 }
 0x1d4   : > { %3785 = vmatmul.mubr.msk.bf16.gmra.mrb[36].mxu1 %vm2771_vm9, %v2758_v21 }
 0x1d5   : > { %3788 = vmatprep.mubr.msk.bf16.mxu1 %vm2771_vm9, %v2759_v62 }
 0x1dc   : > { %3789 = vmatmul.mubr.msk.bf16.gmra.mrb[40].mxu1 %vm2771_vm9, %v2760_v48 }
 0x1dd   : > { %3792 = vmatprep.mubr.msk.bf16.mxu1 %vm2771_vm9, %v2761_v60 }
 0x1e4   : > { %3793 = vmatmul.mubr.msk.bf16.gmra.mrb[44].mxu1 %vm2771_vm9, %v2762_v40 }
 0x27f   : > { %v3764_v12 = vpop.f32.mrb[16].mxu1 }
 0x280   : > { %v2843_v20 = vadd.f32 %v3764_v12, %v4981_v23  ;;  %v2834_v11 = vpop.f32.mrb[17].mxu1 }
 0x281   : > { %v2835_v31 = vadd.f32 %v4981_v23, %v2834_v11  ;;  %v3765_v25 = vpop.f32.mrb[18].mxu1 }
 0x282   : > { %v2899_v24 = vmax.f32 %v2843_v20, 0.0  ;;  %v2846_v42 = vadd.f32 %v3765_v25, %v4981_v23  ;;  %v2837_v38 = vpop.f32.mrb[19].mxu1 }
 0x283   : > { %v2897_v15 = vmax.f32 %v2835_v31, 0.0  ;;  %v2838_v1 = vadd.f32 %v4981_v23, %v2837_v38 }
 0x284   : > { %2915 = vst.msk [vmem:[%s4987_s28 + $0x20] sm:$0xff] %vm2771_vm9, %v2899_v24  ;;  %v2900_v0 = vmax.f32 %v2846_v42, 0.0 }
 0x285   : > { %2913 = vst.msk [vmem:[%s4987_s28] sm:$0xff] %vm2771_vm9, %v2897_v15  ;;  %v2898_v36 = vmax.f32 %v2838_v1, 0.0 }
 0x286   : > { %2916 = vst.msk [vmem:[%s4987_s28 + $0x28] sm:$0xff] %vm2771_vm9, %v2900_v0 }
 0x287   : > { %2914 = vst.msk [vmem:[%s4987_s28 + $0x8] sm:$0xff] %vm2771_vm9, %v2898_v36  ;;  %v3768_v2 = vpop.f32.mrb[20].mxu1 }
 0x288   : > { %v2859_v43 = vadd.f32 %v3768_v2, %v4981_v23  ;;  %v2850_v50 = vpop.f32.mrb[21].mxu1 }
 0x289   : > { %v2851_v7 = vadd.f32 %v4981_v23, %v2850_v50  ;;  %v3769_v17 = vpop.f32.mrb[22].mxu1 }
 0x28a   : > { %v2903_v5 = vmax.f32 %v2859_v43, 0.0  ;;  %v2862_v59 = vadd.f32 %v3769_v17, %v4981_v23  ;;  %v2853_v34 = vpop.f32.mrb[23].mxu1 }
 0x28b   : > { %v2901_v53 = vmax.f32 %v2851_v7, 0.0  ;;  %v2854_v26 = vadd.f32 %v4981_v23, %v2853_v34 }
 0x28c   : > { %2919 = vst.msk [vmem:[%s4987_s28 + $0x60] sm:$0xff] %vm2771_vm9, %v2903_v5  ;;  %v2904_v19 = vmax.f32 %v2862_v59, 0.0 }
 0x28d   : > { %2917 = vst.msk [vmem:[%s4987_s28 + $0x40] sm:$0xff] %vm2771_vm9, %v2901_v53  ;;  %v2902_v49 = vmax.f32 %v2854_v26, 0.0 }
 0x28e   : > { %2920 = vst.msk [vmem:[%s4987_s28 + $0x68] sm:$0xff] %vm2771_vm9, %v2904_v19 }
 0x28f   : > { %2918 = vst.msk [vmem:[%s4987_s28 + $0x48] sm:$0xff] %vm2771_vm9, %v2902_v49  ;;  %v3772_v46 = vpop.f32.mrb[24].mxu1 }
 0x290   : > { %v2875_v39 = vadd.f32 %v3772_v46, %v4981_v23  ;;  %v2866_v21 = vpop.f32.mrb[25].mxu1 }
 0x291   : > { %v2867_v61 = vadd.f32 %v4981_v23, %v2866_v21  ;;  %v3773_v45 = vpop.f32.mrb[26].mxu1 }
 0x292   : > { %v2907_v55 = vmax.f32 %v2875_v39, 0.0  ;;  %v2878_v6 = vadd.f32 %v3773_v45, %v4981_v23  ;;  %v2869_v27 = vpop.f32.mrb[27].mxu1 }
 0x293   : > { %v2905_v4 = vmax.f32 %v2867_v61, 0.0  ;;  %v2870_v13 = vadd.f32 %v4981_v23, %v2869_v27 }
 0x294   : > { %2923 = vst.msk [vmem:[%s4987_s28 + $0xa0] sm:$0xff] %vm2771_vm9, %v2907_v55  ;;  %v2908_v10 = vmax.f32 %v2878_v6, 0.0 }
 0x295   : > { %2921 = vst.msk [vmem:[%s4987_s28 + $0x80] sm:$0xff] %vm2771_vm9, %v2905_v4  ;;  %v2906_v52 = vmax.f32 %v2870_v13, 0.0 }
 0x296   : > { %2924 = vst.msk [vmem:[%s4987_s28 + $0xa8] sm:$0xff] %vm2771_vm9, %v2908_v10 }
 0x297   : > { %2922 = vst.msk [vmem:[%s4987_s28 + $0x88] sm:$0xff] %vm2771_vm9, %v2906_v52  ;;  %v3776_v32 = vpop.f32.mrb[28].mxu1 }
 0x298   : > { %v2891_v29 = vadd.f32 %v3776_v32, %v4981_v23  ;;  %v2882_v44 = vpop.f32.mrb[29].mxu1 }
 0x299   : > { %v2883_v58 = vadd.f32 %v4981_v23, %v2882_v44  ;;  %v3777_v28 = vpop.f32.mrb[30].mxu1 }
 0x29a   : > { %v2911_v63 = vmax.f32 %v2891_v29, 0.0  ;;  %v2894_v47 = vadd.f32 %v3777_v28, %v4981_v23  ;;  %v2885_v57 = vpop.f32.mrb[31].mxu1 }
 0x29b   : > { %v2909_v48 = vmax.f32 %v2883_v58, 0.0  ;;  %v2886_v33 = vadd.f32 %v4981_v23, %v2885_v57 }
 0x29c   : > { %2927 = vst.msk [vmem:[%s4987_s28 + $0xe0] sm:$0xff] %vm2771_vm9, %v2911_v63  ;;  %v2912_v9 = vmax.f32 %v2894_v47, 0.0 }
 0x29d   : > { %2925 = vst.msk [vmem:[%s4987_s28 + $0xc0] sm:$0xff] %vm2771_vm9, %v2909_v48  ;;  %v2910_v62 = vmax.f32 %v2886_v33, 0.0 }
 0x29e   : > { %2928 = vst.msk [vmem:[%s4987_s28 + $0xe8] sm:$0xff] %vm2771_vm9, %v2912_v9 }
 0x29f   : > { %2926 = vst.msk [vmem:[%s4987_s28 + $0xc8] sm:$0xff] %vm2771_vm9, %v2910_v62  ;;  %v3782_v35 = vpop.f32.mrb[32].mxu1 }
 0x2a0   : > { %v2984_v18 = vadd.f32 %v3782_v35, %v4981_v23  ;;  %v2975_v16 = vpop.f32.mrb[33].mxu1 }
 0x2a1   : > { %v2976_v51 = vadd.f32 %v4981_v23, %v2975_v16  ;;  %v3783_v22 = vpop.f32.mrb[34].mxu1 }
 0x2a2   : > { %v3040_v3 = vmax.f32 %v2984_v18, 0.0  ;;  %v2987_v41 = vadd.f32 %v3783_v22, %v4981_v23  ;;  %v2978_v54 = vpop.f32.mrb[35].mxu1 }
 0x2a3   : > { %v3038_v56 = vmax.f32 %v2976_v51, 0.0  ;;  %v2979_v37 = vadd.f32 %v4981_v23, %v2978_v54 }
 0x2a4   : > { %3482 = vst.msk [vmem:[%s4987_s28 + $0x30] sm:$0xff] %vm2771_vm9, %v3040_v3  ;;  %v3041_v8 = vmax.f32 %v2987_v41, 0.0 }
 0x2a5   : > { %3480 = vst.msk [vmem:[%s4987_s28 + $0x10] sm:$0xff] %vm2771_vm9, %v3038_v56  ;;  %v3039_v14 = vmax.f32 %v2979_v37, 0.0 }
 0x2a6   : > { %3483 = vst.msk [vmem:[%s4987_s28 + $0x38] sm:$0xff] %vm2771_vm9, %v3041_v8 }
 0x2a7   : > { %3481 = vst.msk [vmem:[%s4987_s28 + $0x18] sm:$0xff] %vm2771_vm9, %v3039_v14  ;;  %v3786_v30 = vpop.f32.mrb[36].mxu1 }
 0x2a8   : > { %v3000_v40 = vadd.f32 %v3786_v30, %v4981_v23  ;;  %v2991_v60 = vpop.f32.mrb[37].mxu1 }
 0x2a9   : > { %v2992_v12 = vadd.f32 %v4981_v23, %v2991_v60  ;;  %v3787_v20 = vpop.f32.mrb[38].mxu1 }
 0x2aa   : > { %v3044_v11 = vmax.f32 %v3000_v40, 0.0  ;;  %v3003_v31 = vadd.f32 %v3787_v20, %v4981_v23  ;;  %v2994_v25 = vpop.f32.mrb[39].mxu1 }
 0x2ab   : > { %v3042_v24 = vmax.f32 %v2992_v12, 0.0  ;;  %v2995_v42 = vadd.f32 %v4981_v23, %v2994_v25 }
 0x2ac   : > { %3486 = vst.msk [vmem:[%s4987_s28 + $0x70] sm:$0xff] %vm2771_vm9, %v3044_v11  ;;  %v3045_v38 = vmax.f32 %v3003_v31, 0.0 }
 0x2ad   : > { %3484 = vst.msk [vmem:[%s4987_s28 + $0x50] sm:$0xff] %vm2771_vm9, %v3042_v24  ;;  %v3043_v15 = vmax.f32 %v2995_v42, 0.0 }
 0x2ae   : > { %3487 = vst.msk [vmem:[%s4987_s28 + $0x78] sm:$0xff] %vm2771_vm9, %v3045_v38 }
 0x2af   : > { %3485 = vst.msk [vmem:[%s4987_s28 + $0x58] sm:$0xff] %vm2771_vm9, %v3043_v15  ;;  %v3790_v1 = vpop.f32.mrb[40].mxu1 }
 0x2b0   : > { %v3016_v0 = vadd.f32 %v3790_v1, %v4981_v23  ;;  %v3007_v36 = vpop.f32.mrb[41].mxu1 }
 0x2b1   : > { %v3008_v2 = vadd.f32 %v4981_v23, %v3007_v36  ;;  %v3791_v43 = vpop.f32.mrb[42].mxu1 }
 0x2b2   : > { %v3048_v50 = vmax.f32 %v3016_v0, 0.0  ;;  %v3019_v7 = vadd.f32 %v3791_v43, %v4981_v23  ;;  %v3010_v17 = vpop.f32.mrb[43].mxu1 }
 0x2b3   : > { %v3046_v5 = vmax.f32 %v3008_v2, 0.0  ;;  %v3011_v59 = vadd.f32 %v4981_v23, %v3010_v17 }
 0x2b4   : > { %3490 = vst.msk [vmem:[%s4987_s28 + $0xb0] sm:$0xff] %vm2771_vm9, %v3048_v50  ;;  %v3049_v34 = vmax.f32 %v3019_v7, 0.0 }
 0x2b5   : > { %3488 = vst.msk [vmem:[%s4987_s28 + $0x90] sm:$0xff] %vm2771_vm9, %v3046_v5  ;;  %v3047_v53 = vmax.f32 %v3011_v59, 0.0 }
 0x2b6   : > { %3491 = vst.msk [vmem:[%s4987_s28 + $0xb8] sm:$0xff] %vm2771_vm9, %v3049_v34 }
 0x2b7   : > { %3489 = vst.msk [vmem:[%s4987_s28 + $0x98] sm:$0xff] %vm2771_vm9, %v3047_v53  ;;  %v3794_v26 = vpop.f32.mrb[44].mxu1 }
 0x2b8   : > { %v3032_v19 = vadd.f32 %v3794_v26, %v4981_v23  ;;  %v3023_v49 = vpop.f32.mrb[45].mxu1 }
 0x2b9   : > { %v3024_v46 = vadd.f32 %v4981_v23, %v3023_v49  ;;  %v3795_v39 = vpop.f32.mrb[46].mxu1 }
 0x2ba   : > { %v3052_v21 = vmax.f32 %v3032_v19, 0.0  ;;  %v3035_v61 = vadd.f32 %v3795_v39, %v4981_v23  ;;  %v3026_v45 = vpop.f32.mrb[47].mxu1 }
 0x2bb   : > { %v3050_v55 = vmax.f32 %v3024_v46, 0.0  ;;  %v3027_v6 = vadd.f32 %v4981_v23, %v3026_v45 }
 0x2bc   : > { %3494 = vst.msk [vmem:[%s4987_s28 + $0xf0] sm:$0xff] %vm2771_vm9, %v3052_v21  ;;  %v3053_v27 = vmax.f32 %v3035_v61, 0.0 }
 0x2bd   : > { %3492 = vst.msk [vmem:[%s4987_s28 + $0xd0] sm:$0xff] %vm2771_vm9, %v3050_v55  ;;  %v3051_v4 = vmax.f32 %v3027_v6, 0.0 }
 0x2be   : > { %3495 = vst.msk [vmem:[%s4987_s28 + $0xf8] sm:$0xff] %vm2771_vm9, %v3053_v27 }
 0x2bf   : > { %3493 = vst.msk [vmem:[%s4987_s28 + $0xd8] sm:$0xff] %vm2771_vm9, %v3051_v4 }
 0x2c0 PF: > { %s15_s22 = sadd.s32 1, %s4041_s22   ;;  %s5128_s18 = smov %s4033_s20 }
 0x2c1   : > { %p12_p7 = scmp.ge.s32.totalorder %s15_s22, 6   ;;  %s5129_s19 = smov %s4037_s21 }
 0x2c2   : > { %s5130_s20 = smov %s5133_s23  ;;  %s5131_s21 = smov %s5137_s24 }
 0x2c3   :  { %14 = sbr.rel (!%p12_p7) target bundleno = 3 (0x3), region = 83 }

</bundles_post_ra>
